<compile_context>
chip_gen: v5e
topology: v5e:2x2
jax: 0.10.0
libtpu: 0.0.40
codegen_flags: <defaults>
</compile_context>

<pallas_src>
import math
from functools import partial

import jax
import jax.numpy as jnp
from jax.experimental import pallas as pl
from jax.experimental.pallas import tpu as pltpu


# ----------------------------- math helpers (kernel-side) --------------------

def _silu(x):
    # EUP exp + EUP approx reciprocal (no full-precision divide on the hot path)
    return x * pl.reciprocal(1.0 + jnp.exp(-x), approx=True)


def _softplus(x):
    return jnp.maximum(x, 0.0) + jnp.log1p(jnp.exp(-jnp.abs(x)))


# ----------------------------- hardware queries -------------------------------

def _device_kind():
    try:
        return jax.devices()[0].device_kind.lower()
    except Exception:
        return ""


def _vmem_capacity_bytes():
    try:
        return int(pltpu.get_tpu_info().vmem_capacity_bytes)
    except Exception:
        return (64 << 20) if "v7" in _device_kind() else (128 << 20)


# ----------------------------- row-tiled dense kernels -----------------------
# Only the tiny input Linear and the final LayerNorm remain outside the fused layer.

def _linear_bias_kernel(x_ref, w_ref, b_ref, o_ref):
    o_ref[...] = (jnp.dot(x_ref[...], w_ref[...],
                          preferred_element_type=jnp.float32)
                  + b_ref[...]).astype(o_ref.dtype)


def _layernorm_kernel(x_ref, g_ref, b_ref, o_ref):
    x = x_ref[...].astype(jnp.float32)
    mean = jnp.mean(x, axis=-1, keepdims=True)
    var = jnp.mean((x - mean) ** 2, axis=-1, keepdims=True)
    o_ref[...] = ((x - mean) * jax.lax.rsqrt(var + 1e-5) * g_ref[...]
                  + b_ref[...]).astype(o_ref.dtype)


_ROW_TILE = 512  # rows per block for the dense kernels


def _row_grid(M):
    bm = M if M <= _ROW_TILE else _ROW_TILE
    return bm, -(-M // bm)


def pallas_linear_bias(x2d, w_t, b):
    M, K = x2d.shape
    N = w_t.shape[1]
    bm, nb = _row_grid(M)
    return pl.pallas_call(
        _linear_bias_kernel,
        out_shape=jax.ShapeDtypeStruct((M, N), x2d.dtype),
        grid=(nb,),
        in_specs=[pl.BlockSpec((bm, K), lambda i: (i, 0)),
                  pl.BlockSpec((K, N), lambda i: (0, 0)),
                  pl.BlockSpec((1, N), lambda i: (0, 0))],
        out_specs=pl.BlockSpec((bm, N), lambda i: (i, 0)),
        compiler_params=pltpu.CompilerParams(dimension_semantics=("parallel",)),
    )(x2d, w_t, b.reshape(1, N))


def pallas_layernorm(x2d, g, b):
    M, D = x2d.shape
    bm, nb = _row_grid(M)
    return pl.pallas_call(
        _layernorm_kernel,
        out_shape=jax.ShapeDtypeStruct((M, D), x2d.dtype),
        grid=(nb,),
        in_specs=[pl.BlockSpec((bm, D), lambda i: (i, 0)),
                  pl.BlockSpec((1, D), lambda i: (0, 0)),
                  pl.BlockSpec((1, D), lambda i: (0, 0))],
        out_specs=pl.BlockSpec((bm, D), lambda i: (i, 0)),
        compiler_params=pltpu.CompilerParams(dimension_semantics=("parallel",)),
    )(x2d, g.reshape(1, D), b.reshape(1, D))


# ----------------------------- fused Mamba layer kernel ----------------------
# One kernel per layer: LN + in_proj + conv + SSM + gate + out_proj + residual.

def _mamba_layer_kernel(h_ref, lng_ref, lnb_ref, wx_ref, wz_ref, convw_ref,
                        convb_ref, wcat_ref, dtw_ref, dtb_ref, AT_ref, D_ref,
                        wout_ref, o_ref,
                        xn_ref, xpad_ref, u_ref, cm_ref, dA_ref, s_ref, state_ref,
                        *, d_inner, dt_rank, d_state, d_conv, n_chunks, unroll):
    f32 = jnp.float32
    Lc = o_ref.shape[1]
    lc = pl.program_id(1)

    @pl.when(lc == 0)
    def _init():
        # new batch element: reset conv history (rows 0:8 of xpad) and SSM state
        xpad_ref[0:8, :] = jnp.zeros((8, d_inner), f32)
        state_ref[...] = jnp.zeros((d_state, d_inner), f32)

    # ---- LayerNorm + in_proj (x half) ---------------------------------------
    h = h_ref[0].astype(f32)                                   # (Lc, d_model)
    mean = jnp.mean(h, axis=-1, keepdims=True)
    var = jnp.mean((h - mean) ** 2, axis=-1, keepdims=True)
    xn = (h - mean) * jax.lax.rsqrt(var + 1e-5) * lng_ref[...] + lnb_ref[...]
    xn_ref[...] = xn                                           # reused for the z half
    x = jnp.dot(xn.astype(wx_ref.dtype), wx_ref[...],
                preferred_element_type=f32)                    # (Lc, d_inner)

    # ---- causal depthwise conv1d + SiLU -------------------------------------
    xpad_ref[8:8 + Lc, :] = x
    base = 8 - (d_conv - 1)
    acc = convb_ref[...]                                       # (1, d_inner)
    for k in range(d_conv):                                    # d_conv is tiny
        acc = acc + xpad_ref[base + k:base + k + Lc, :] * convw_ref[k:k + 1, :]
    u = _silu(acc)                                             # (Lc, d_inner)
    u_ref[...] = u
    if n_chunks > 1:
        # carry the last 8 raw-x rows as the conv state for the next chunk
        xpad_ref[0:8, :] = xpad_ref[Lc:Lc + 8, :]

    # ---- input-dependent SSM params: ONE fused matmul, 128-aligned segments --
    xdbl = jnp.dot(u.astype(wcat_ref.dtype), wcat_ref[...],
                   preferred_element_type=f32)                 # (Lc, 256 + d_state)
    dt_low = xdbl[:, 0:dt_rank]
    Bm = xdbl[:, 128:128 + d_state]
    cm_ref[...] = xdbl[:, 256:256 + d_state]

    # dt_proj: contraction K == dt_rank (tiny) -> VPU fmas instead of MXU
    delta = dt_low[:, 0:1] * dtw_ref[0:1, :] + dtb_ref[...]
    for r in range(1, dt_rank):
        delta = delta + dt_low[:, r:r + 1] * dtw_ref[r:r + 1, :]
    delta = _softplus(delta)                                   # (Lc, d_inner), f32

    # ---- hoist transcendentals / outer products out of the scan -------------
    # dA in exp dtype (bf16 on v6e/v7x); dB*u and the recurrence stay f32.
    dA_ref[...] = jnp.exp(delta.astype(AT_ref.dtype)[:, None, :]
                          * AT_ref[...][None, :, :])
    s_ref[...] = (delta * u)[:, None, :] * Bm[:, :, None]      # dB*u

    # ---- sequential selective scan: pure multiply-add per step --------------
    def body(t, s):
        dA_t = dA_ref[pl.ds(t, 1), :, :][0].astype(f32)
        dBu_t = s_ref[pl.ds(t, 1), :, :][0]
        s = dA_t * s + dBu_t
        s_ref[pl.ds(t, 1), :, :] = s[None]                     # keep per-step state
        return s

    s_fin = jax.lax.fori_loop(0, Lc, body, state_ref[...], unroll=unroll)
    if n_chunks > 1:
        state_ref[...] = s_fin

    # ---- y = C.s + D*u (single contiguous slab contraction) -----------------
    y = u_ref[...] * D_ref[...] + jnp.sum(
        s_ref[...] * cm_ref[...][:, :, None], axis=1)          # (Lc, d_inner)

    # ---- gate with SiLU(z), out_proj, residual -------------------------------
    z = jnp.dot(xn_ref[...].astype(wz_ref.dtype), wz_ref[...],
                preferred_element_type=f32)
    y = y * _silu(z)
    o_ref[...] = (h_ref[0].astype(f32)
                  + jnp.dot(y.astype(wout_ref.dtype), wout_ref[...],
                            preferred_element_type=f32))[None].astype(o_ref.dtype)


def _pick_unroll(Lc):
    for u in (8, 4, 2):
        if Lc % u == 0:
            return u
    return 1


def _choose_chunk(L, d_model, d_inner, d_state, exp_bytes, budget_bytes):
    # per-Lc-row scratch bytes: dA + dBu/state slabs dominate
    per_row = (d_state * d_inner * (4 + exp_bytes)
               + 4 * (3 * d_inner + d_model + d_state))
    cap = budget_bytes // max(per_row, 1)
    cap = max(8, min(512, (cap // 8) * 8))
    if L <= cap:
        return L
    for c in range(cap, 7, -8):      # prefer a multiple of 8 that divides L
        if L % c == 0:
            return c
    return cap                        # wrapper pads L up to n_chunks * Lc


def pallas_mamba_layer(h, lp, *, mm_dtype, exp_dtype):
    """h: (B, L, d_model) -> h + Mamba(LayerNorm(h)), fused in one pallas_call."""
    Bsz, L, d_model = h.shape
    d_inner = lp["D"].shape[0]
    d_state = lp["A_log"].shape[1]
    dt_rank = lp["dt_proj_w"].shape[1]
    d_conv = lp["conv_w"].shape[1]
    assert d_conv - 1 <= 8, "conv history is carried in an 8-row scratch slab"
    assert d_state <= 128 and dt_rank <= 128

    exp_bytes = jnp.dtype(exp_dtype).itemsize
    mm_bytes = jnp.dtype(mm_dtype).itemsize
    vmem_cap = _vmem_capacity_bytes()
    # generation-aware scoped-VMEM ceiling (~40 MiB on v7x, up to 80-100 MiB on v5e/v6e)
    vmem_ceiling = int(min(vmem_cap * 5 // 8, 100 << 20))

    Lc = _choose_chunk(L, d_model, d_inner, d_state, exp_bytes, vmem_ceiling // 2)
    n_chunks = -(-L // Lc)
    Lpad = n_chunks * Lc
    if Lpad != L:
        h = jnp.pad(h, ((0, 0), (0, Lpad - L), (0, 0)))

    # ---- weights (transposed to (in, out)); matmul operands optionally bf16 (v5e)
    w_in = lp["in_proj_w"].T.astype(mm_dtype)                  # (d_model, 2*d_inner)
    w_x, w_z = w_in[:, :d_inner], w_in[:, d_inner:]
    w_out = lp["out_proj_w"].T.astype(mm_dtype)                # (d_inner, d_model)
    xp = lp["x_proj_w"]                                        # (dt_rank+2*d_state, d_inner)
    # fused x_proj weight with dt / B / C segments at 128-lane-aligned offsets
    w_cat = jnp.zeros((d_inner, 256 + d_state), mm_dtype)
    w_cat = w_cat.at[:, 0:dt_rank].set(xp[:dt_rank].T.astype(mm_dtype))
    w_cat = w_cat.at[:, 128:128 + d_state].set(
        xp[dt_rank:dt_rank + d_state].T.astype(mm_dtype))
    w_cat = w_cat.at[:, 256:256 + d_state].set(
        xp[dt_rank + d_state:].T.astype(mm_dtype))
    A_T = (-jnp.exp(lp["A_log"])).T.astype(exp_dtype)          # (d_state, d_inner)

    unroll = _pick_unroll(Lc)
    kernel = partial(_mamba_layer_kernel, d_inner=d_inner, dt_rank=dt_rank,
                     d_state=d_state, d_conv=d_conv, n_chunks=n_chunks,
                     unroll=unroll)
    full = lambda b, c: (0, 0)

    # scoped-VMEM sizing: scratch counted once (not double-buffered), IO blocks 2x,
    # weights 2x for headroom, + margin.
    scratch_bytes = (4 * ((Lc + 8) * d_inner + Lc * d_inner + Lc * d_model
                          + Lc * d_state + Lc * d_state * d_inner
                          + d_state * d_inner)
                     + exp_bytes * Lc * d_state * d_inner)
    io_bytes = 2 * 2 * 4 * Lc * d_model
    weight_bytes = (mm_bytes * (2 * d_model * d_inner + d_inner * (256 + d_state)
                                + d_inner * d_model)
                    + exp_bytes * d_state * d_inner
                    + 4 * d_inner * (d_conv + dt_rank + 3) + 4 * 2 * d_model)
    needed = scratch_bytes + io_bytes + 2 * weight_bytes + (4 << 20)
    vmem_limit = int(min(vmem_ceiling, max(needed, 32 << 20)))

    out = pl.pallas_call(
        kernel,
        out_shape=jax.ShapeDtypeStruct((Bsz, Lpad, d_model), h.dtype),
        grid_spec=pltpu.PrefetchScalarGridSpec(
            num_scalar_prefetch=0,
            grid=(Bsz, n_chunks),
            in_specs=[
                pl.BlockSpec((1, Lc, d_model), lambda b, c: (b, c, 0)),   # h
                pl.BlockSpec((1, d_model), full),                          # ln_g
                pl.BlockSpec((1, d_model), full),                          # ln_b
                pl.BlockSpec((d_model, d_inner), full),                    # W_x
                pl.BlockSpec((d_model, d_inner), full),                    # W_z
                pl.BlockSpec((d_conv, d_inner), full),                     # conv_w^T
                pl.BlockSpec((1, d_inner), full),                          # conv_b
                pl.BlockSpec((d_inner, 256 + d_state), full),              # w_cat
                pl.BlockSpec((dt_rank, d_inner), full),                    # dt_w^T
                pl.BlockSpec((1, d_inner), full),                          # dt_b
                pl.BlockSpec((d_state, d_inner), full),                    # A^T
                pl.BlockSpec((1, d_inner), full),                          # D
                pl.BlockSpec((d_inner, d_model), full),                    # W_out
            ],
            out_specs=pl.BlockSpec((1, Lc, d_model), lambda b, c: (b, c, 0)),
            scratch_shapes=[
                pltpu.VMEM((Lc, d_model), jnp.float32),            # xn (LN output)
                pltpu.VMEM((Lc + 8, d_inner), jnp.float32),        # conv pad + history
                pltpu.VMEM((Lc, d_inner), jnp.float32),            # u = silu(conv(x))
                pltpu.VMEM((Lc, d_state), jnp.float32),            # C(t)
                pltpu.VMEM((Lc, d_state, d_inner), exp_dtype),     # dA (pre-exp'd)
                pltpu.VMEM((Lc, d_state, d_inner), jnp.float32),   # dB*u / per-step states
                pltpu.VMEM((d_state, d_inner), jnp.float32),       # carried SSM state
            ]),
        compiler_params=pltpu.CompilerParams(
            dimension_semantics=("parallel", "arbitrary"),
            vmem_limit_bytes=vmem_limit),
    )(h, lp["ln_g"].reshape(1, d_model), lp["ln_b"].reshape(1, d_model),
      w_x, w_z, lp["conv_w"].T, lp["conv_b"].reshape(1, d_inner),
      w_cat, lp["dt_proj_w"].T, lp["dt_proj_b"].reshape(1, d_inner),
      A_T, lp["D"].reshape(1, d_inner), w_out)

    if Lpad != L:
        out = out[:, :L, :]
    return out


# ----------------------------- full forward (Pallas) -------------------------

def mamba_traj_encoder_forward(seq, params):
    """Equivalent to MambaTrajEncoder.forward(seq, hidden_state=None)[0]."""
    Bsz, L, tstep_dim = seq.shape
    d_model = params["inp_w"].shape[0]
    M = Bsz * L

    kind = _device_kind()
    exp_dtype = jnp.bfloat16 if ("v6" in kind or "v7" in kind) else jnp.float32
    mm_dtype = jnp.bfloat16 if "v5" in kind else jnp.float32

    h = pallas_linear_bias(seq.reshape(M, tstep_dim),
                           params["inp_w"].T, params["inp_b"])   # (M, d_model)
    h = h.reshape(Bsz, L, d_model)

    for lp in params["layers"]:
        h = pallas_mamba_layer(h, lp, mm_dtype=mm_dtype, exp_dtype=exp_dtype)

    out = pallas_layernorm(h.reshape(M, d_model), params["out_g"], params["out_b"])
    return out.reshape(Bsz, L, d_model)


# ----------------------------- pure-JAX reference ----------------------------

def _ref_layernorm(x, g, b):
    m = jnp.mean(x, axis=-1, keepdims=True)
    v = jnp.mean((x - m) ** 2, axis=-1, keepdims=True)
    return (x - m) * jax.lax.rsqrt(v + 1e-5) * g + b


def _ref_silu(x):
    return x / (1.0 + jnp.exp(-x))


def ref_forward(seq, params):
    h = seq @ params["inp_w"].T + params["inp_b"]
    for lp in params["layers"]:
        x_in = _ref_layernorm(h, lp["ln_g"], lp["ln_b"])
        xz = x_in @ lp["in_proj_w"].T
        d_inner = lp["D"].shape[0]
        x, z = xz[..., :d_inner], xz[..., d_inner:]
        d_conv = lp["conv_w"].shape[1]
        L = x.shape[1]
        xpad = jnp.pad(x, ((0, 0), (d_conv - 1, 0), (0, 0)))
        xc = lp["conv_b"][None, None, :]
        for k in range(d_conv):
            xc = xc + xpad[:, k:k + L, :] * lp["conv_w"][:, k][None, None, :]
        u = _ref_silu(xc)
        x_dbl = u @ lp["x_proj_w"].T
        dt_rank = lp["dt_proj_w"].shape[1]
        d_state = lp["A_log"].shape[1]
        dt = x_dbl[..., :dt_rank]
        Bm = x_dbl[..., dt_rank:dt_rank + d_state]
        Cm = x_dbl[..., dt_rank + d_state:]
        delta = jax.nn.softplus(dt @ lp["dt_proj_w"].T + lp["dt_proj_b"])
        A = -jnp.exp(lp["A_log"])

        def step(s, inp):
            dt_t, B_t, C_t, u_t = inp
            dA = jnp.exp(dt_t[:, :, None] * A[None])
            dBu = dt_t[:, :, None] * B_t[:, None, :] * u_t[:, :, None]
            s = dA * s + dBu
            return s, jnp.sum(s * C_t[:, None, :], axis=-1)

        s0 = jnp.zeros((seq.shape[0], d_inner, d_state), jnp.float32)
        _, ys = jax.lax.scan(step, s0,
                             (delta.transpose(1, 0, 2), Bm.transpose(1, 0, 2),
                              Cm.transpose(1, 0, 2), u.transpose(1, 0, 2)))
        y = ys.transpose(1, 0, 2)
        y = (y + u * lp["D"][None, None, :]) * _ref_silu(z)
        h = h + y @ lp["out_proj_w"].T
    return _ref_layernorm(h, params["out_g"], params["out_b"])


# ----------------------------- deterministic parameter init ------------------

def init_params(key, tstep_dim, d_model, d_state, d_conv, expand, n_layers):
    d_inner = expand * d_model
    dt_rank = math.ceil(d_model / 16)
    keys = iter(jax.random.split(key, 8 * n_layers + 4))

    def w(k, shape, scale=0.02):
        return scale * jax.random.normal(k, shape, jnp.float32)

    params = {
        "inp_w": w(next(keys), (d_model, tstep_dim)),
        "inp_b": w(next(keys), (d_model,)),
        "out_g": jnp.ones((d_model,), jnp.float32),
        "out_b": jnp.zeros((d_model,), jnp.float32),
        "layers": [],
    }
    a_log = jnp.log(jnp.broadcast_to(jnp.arange(1, d_state + 1, dtype=jnp.float32),
                                     (d_inner, d_state)))
    for _ in range(n_layers):
        params["layers"].append({
            "ln_g": jnp.ones((d_model,), jnp.float32),
            "ln_b": jnp.zeros((d_model,), jnp.float32),
            "in_proj_w": w(next(keys), (2 * d_inner, d_model)),
            "conv_w": w(next(keys), (d_inner, d_conv), scale=0.1),
            "conv_b": w(next(keys), (d_inner,), scale=0.1),
            "x_proj_w": w(next(keys), (dt_rank + 2 * d_state, d_inner)),
            "dt_proj_w": w(next(keys), (d_inner, dt_rank), scale=0.1),
            "dt_proj_b": w(next(keys), (d_inner,), scale=0.1),
            "A_log": a_log,
            "D": jnp.ones((d_inner,), jnp.float32),
            "out_proj_w": w(next(keys), (d_model, d_inner)),
        })
    return params


# ----------------------------- main -------------------------------------------

if __name__ == "__main__":
    B, L, tstep_dim = 2, 8, 16
    d_model, d_state, d_conv, expand, n_layers = 32, 16, 4, 2, 3

    key = jax.random.PRNGKey(0)
    pkey, xkey = jax.random.split(key)
    params = init_params(pkey, tstep_dim, d_model, d_state, d_conv, expand,
                         n_layers)
    seq = jax.random.normal(xkey, (B, L, tstep_dim), jnp.float32)

    fwd = jax.jit(mamba_traj_encoder_forward)
    out = jax.block_until_ready(fwd(seq, params))

    ref = jax.block_until_ready(ref_forward(seq, params))
    assert out.shape == (B, L, d_model)
    assert bool(jnp.all(jnp.isfinite(out)))
    err = float(jnp.max(jnp.abs(out - ref)))
    assert err < 2e-2, f"mismatch vs JAX reference: {err}"
    print("KERNEL_OK")
</pallas_src>

<mosaic_0001>
module attributes {stable_mosaic.version = 11 : i64} {
  func.func @_linear_bias_kernel(%arg0: i32, %arg1: memref<16x16xf32, #tpu.memory_space<vmem>>, %arg2: memref<16x32xf32, #tpu.memory_space<vmem>>, %arg3: memref<1x32xf32, #tpu.memory_space<vmem>>, %arg4: memref<16x32xf32, #tpu.memory_space<vmem>>) attributes {dimension_semantics = [#tpu.dimension_semantics<parallel>], iteration_bounds = array<i64: 1>, scalar_prefetch = 0 : i64, scratch_operands = 0 : i64, tpu.core_type = #tpu.core_type<tc>, window_params = [{transform_indices = @transform_0, window_bounds = array<i64: 16, 16>}, {pipeline_mode = #tpu.pipeline_mode<synchronous>, transform_indices = @transform_1, window_bounds = array<i64: 16, 32>}, {pipeline_mode = #tpu.pipeline_mode<synchronous>, transform_indices = @transform_2, window_bounds = array<i64: 1, 32>}, {transform_indices = @transform_3, window_bounds = array<i64: 16, 32>}]} {
    %c0 = arith.constant 0 : index
    %c0_0 = arith.constant 0 : index
    %0 = vector.load %arg1[%c0, %c0_0] : memref<16x16xf32, #tpu.memory_space<vmem>>, vector<16x16xf32>
    %c0_1 = arith.constant 0 : index
    %c0_2 = arith.constant 0 : index
    %1 = vector.load %arg2[%c0_1, %c0_2] : memref<16x32xf32, #tpu.memory_space<vmem>>, vector<16x32xf32>
    %cst = arith.constant dense<0.000000e+00> : vector<16x32xf32>
    %2 = tpu.matmul %0, %1, %cst {dimension_numbers = #tpu.dot_dimension_numbers<[1], [0], [0], [1], [0, 0, 1, 1], [], []>} : vector<16x16xf32>, vector<16x32xf32>, vector<16x32xf32> -> vector<16x32xf32>
    %c0_3 = arith.constant 0 : index
    %c0_4 = arith.constant 0 : index
    %3 = vector.load %arg3[%c0_3, %c0_4] : memref<1x32xf32, #tpu.memory_space<vmem>>, vector<1x32xf32>
    %4 = vector.broadcast %3 : vector<1x32xf32> to vector<16x32xf32>
    %5 = arith.addf %2, %4 : vector<16x32xf32>
    %c0_5 = arith.constant 0 : index
    %c0_6 = arith.constant 0 : index
    %6 = vector.load %arg4[%c0_5, %c0_6] : memref<16x32xf32, #tpu.memory_space<vmem>>, vector<16x32xf32>
    tpu.vector_store %arg4[%c0_5, %c0_6], %5 {strides = array<i32>} : memref<16x32xf32, #tpu.memory_space<vmem>>, vector<16x32xf32>,
    return
  }
  func.func @transform_0(%arg0: i32) -> (i32, i32) {
    %c0_i32 = arith.constant 0 : i32
    %c0_i32_0 = arith.constant 0 : i32
    return %arg0, %c0_i32 : i32, i32
  }
  func.func @transform_1(%arg0: i32) -> (i32, i32) {
    %c0_i32 = arith.constant 0 : i32
    %c0_i32_0 = arith.constant 0 : i32
    %c0_i32_1 = arith.constant 0 : i32
    return %c0_i32, %c0_i32_0 : i32, i32
  }
  func.func @transform_2(%arg0: i32) -> (i32, i32) {
    %c0_i32 = arith.constant 0 : i32
    %c0_i32_0 = arith.constant 0 : i32
    %c0_i32_1 = arith.constant 0 : i32
    return %c0_i32, %c0_i32_0 : i32, i32
  }
  func.func @transform_3(%arg0: i32) -> (i32, i32) {
    %c0_i32 = arith.constant 0 : i32
    %c0_i32_0 = arith.constant 0 : i32
    return %arg0, %c0_i32 : i32, i32
  }
}

module attributes {stable_mosaic.version = 11 : i64} {
  func.func @_layernorm_kernel(%arg0: i32, %arg1: memref<16x32xf32, #tpu.memory_space<vmem>>, %arg2: memref<1x32xf32, #tpu.memory_space<vmem>>, %arg3: memref<1x32xf32, #tpu.memory_space<vmem>>, %arg4: memref<16x32xf32, #tpu.memory_space<vmem>>) attributes {dimension_semantics = [#tpu.dimension_semantics<parallel>], iteration_bounds = array<i64: 1>, scalar_prefetch = 0 : i64, scratch_operands = 0 : i64, tpu.core_type = #tpu.core_type<tc>, window_params = [{transform_indices = @transform_0, window_bounds = array<i64: 16, 32>}, {pipeline_mode = #tpu.pipeline_mode<synchronous>, transform_indices = @transform_1, window_bounds = array<i64: 1, 32>}, {pipeline_mode = #tpu.pipeline_mode<synchronous>, transform_indices = @transform_2, window_bounds = array<i64: 1, 32>}, {transform_indices = @transform_3, window_bounds = array<i64: 16, 32>}]} {
    %c0 = arith.constant 0 : index
    %c0_0 = arith.constant 0 : index
    %0 = vector.load %arg1[%c0, %c0_0] : memref<16x32xf32, #tpu.memory_space<vmem>>, vector<16x32xf32>
    %cst = arith.constant dense<0.000000e+00> : vector<16xf32>
    %1 = vector.multi_reduction <add>, %0, %cst [1] : vector<16x32xf32> to vector<16xf32>
    %2 = vector.shape_cast %1 : vector<16xf32> to vector<16x1xf32>
    %cst_1 = arith.constant 3.200000e+01 : f32
    %3 = vector.broadcast %cst_1 : f32 to vector<16x1xf32>
    %4 = arith.divf %2, %3 : vector<16x1xf32>
    %5 = vector.broadcast %4 : vector<16x1xf32> to vector<16x32xf32>
    %6 = arith.subf %0, %5 : vector<16x32xf32>
    %7 = arith.mulf %6, %6 : vector<16x32xf32>
    %cst_2 = arith.constant dense<0.000000e+00> : vector<16xf32>
    %8 = vector.multi_reduction <add>, %7, %cst_2 [1] : vector<16x32xf32> to vector<16xf32>
    %9 = vector.shape_cast %8 : vector<16xf32> to vector<16x1xf32>
    %cst_3 = arith.constant 3.200000e+01 : f32
    %10 = vector.broadcast %cst_3 : f32 to vector<16x1xf32>
    %11 = arith.divf %9, %10 : vector<16x1xf32>
    %12 = vector.broadcast %4 : vector<16x1xf32> to vector<16x32xf32>
    %13 = arith.subf %0, %12 : vector<16x32xf32>
    %cst_4 = arith.constant 9.99999974E-6 : f32
    %14 = vector.broadcast %cst_4 : f32 to vector<16x1xf32>
    %15 = arith.addf %11, %14 : vector<16x1xf32>
    %16 = math.rsqrt %15 : vector<16x1xf32>
    %17 = vector.broadcast %16 : vector<16x1xf32> to vector<16x32xf32>
    %18 = arith.mulf %13, %17 : vector<16x32xf32>
    %c0_5 = arith.constant 0 : index
    %c0_6 = arith.constant 0 : index
    %19 = vector.load %arg2[%c0_5, %c0_6] : memref<1x32xf32, #tpu.memory_space<vmem>>, vector<1x32xf32>
    %20 = vector.broadcast %19 : vector<1x32xf32> to vector<16x32xf32>
    %21 = arith.mulf %18, %20 : vector<16x32xf32>
    %c0_7 = arith.constant 0 : index
    %c0_8 = arith.constant 0 : index
    %22 = vector.load %arg3[%c0_7, %c0_8] : memref<1x32xf32, #tpu.memory_space<vmem>>, vector<1x32xf32>
    %23 = vector.broadcast %22 : vector<1x32xf32> to vector<16x32xf32>
    %24 = arith.addf %21, %23 : vector<16x32xf32>
    %c0_9 = arith.constant 0 : index
    %c0_10 = arith.constant 0 : index
    %25 = vector.load %arg4[%c0_9, %c0_10] : memref<16x32xf32, #tpu.memory_space<vmem>>, vector<16x32xf32>
    tpu.vector_store %arg4[%c0_9, %c0_10], %24 {strides = array<i32>} : memref<16x32xf32, #tpu.memory_space<vmem>>, vector<16x32xf32>,
    return
  }
  func.func @transform_0(%arg0: i32) -> (i32, i32) {
    %c0_i32 = arith.constant 0 : i32
    %c0_i32_0 = arith.constant 0 : i32
    return %arg0, %c0_i32 : i32, i32
  }
  func.func @transform_1(%arg0: i32) -> (i32, i32) {
    %c0_i32 = arith.constant 0 : i32
    %c0_i32_0 = arith.constant 0 : i32
    %c0_i32_1 = arith.constant 0 : i32
    return %c0_i32, %c0_i32_0 : i32, i32
  }
  func.func @transform_2(%arg0: i32) -> (i32, i32) {
    %c0_i32 = arith.constant 0 : i32
    %c0_i32_0 = arith.constant 0 : i32
    %c0_i32_1 = arith.constant 0 : i32
    return %c0_i32, %c0_i32_0 : i32, i32
  }
  func.func @transform_3(%arg0: i32) -> (i32, i32) {
    %c0_i32 = arith.constant 0 : i32
    %c0_i32_0 = arith.constant 0 : i32
    return %arg0, %c0_i32 : i32, i32
  }
}

module attributes {stable_mosaic.version = 11 : i64} {
  func.func @_mamba_layer_kernel(%arg0: i32, %arg1: i32, %arg2: memref<1x8x32xf32, #tpu.memory_space<vmem>>, %arg3: memref<1x32xf32, #tpu.memory_space<vmem>>, %arg4: memref<1x32xf32, #tpu.memory_space<vmem>>, %arg5: memref<32x64xf32, #tpu.memory_space<vmem>>, %arg6: memref<32x64xf32, #tpu.memory_space<vmem>>, %arg7: memref<4x64xf32, #tpu.memory_space<vmem>>, %arg8: memref<1x64xf32, #tpu.memory_space<vmem>>, %arg9: memref<64x272xf32, #tpu.memory_space<vmem>>, %arg10: memref<2x64xf32, #tpu.memory_space<vmem>>, %arg11: memref<1x64xf32, #tpu.memory_space<vmem>>, %arg12: memref<16x64xf32, #tpu.memory_space<vmem>>, %arg13: memref<1x64xf32, #tpu.memory_space<vmem>>, %arg14: memref<64x32xf32, #tpu.memory_space<vmem>>, %arg15: memref<1x8x32xf32, #tpu.memory_space<vmem>>, %arg16: memref<8x32xf32, #tpu.memory_space<vmem>>, %arg17: memref<16x64xf32, #tpu.memory_space<vmem>>, %arg18: memref<8x64xf32, #tpu.memory_space<vmem>>, %arg19: memref<8x16xf32, #tpu.memory_space<vmem>>, %arg20: memref<8x16x64xf32, #tpu.memory_space<vmem>>, %arg21: memref<8x16x64xf32, #tpu.memory_space<vmem>>, %arg22: memref<16x64xf32, #tpu.memory_space<vmem>>) attributes {dimension_semantics = [#tpu.dimension_semantics<parallel>, #tpu.dimension_semantics<arbitrary>], iteration_bounds = array<i64: 2, 1>, scalar_prefetch = 0 : i64, scratch_operands = 7 : i64, tpu.core_type = #tpu.core_type<tc>, window_params = [{transform_indices = @transform_0, window_bounds = array<i64: 1, 8, 32>}, {pipeline_mode = #tpu.pipeline_mode<synchronous>, transform_indices = @transform_1, window_bounds = array<i64: 1, 32>}, {pipeline_mode = #tpu.pipeline_mode<synchronous>, transform_indices = @transform_2, window_bounds = array<i64: 1, 32>}, {pipeline_mode = #tpu.pipeline_mode<synchronous>, transform_indices = @transform_3, window_bounds = array<i64: 32, 64>}, {pipeline_mode = #tpu.pipeline_mode<synchronous>, transform_indices = @transform_4, window_bounds = array<i64: 32, 64>}, {pipeline_mode = #tpu.pipeline_mode<synchronous>, transform_indices = @transform_5, window_bounds = array<i64: 4, 64>}, {pipeline_mode = #tpu.pipeline_mode<synchronous>, transform_indices = @transform_6, window_bounds = array<i64: 1, 64>}, {pipeline_mode = #tpu.pipeline_mode<synchronous>, transform_indices = @transform_7, window_bounds = array<i64: 64, 272>}, {pipeline_mode = #tpu.pipeline_mode<synchronous>, transform_indices = @transform_8, window_bounds = array<i64: 2, 64>}, {pipeline_mode = #tpu.pipeline_mode<synchronous>, transform_indices = @transform_9, window_bounds = array<i64: 1, 64>}, {pipeline_mode = #tpu.pipeline_mode<synchronous>, transform_indices = @transform_10, window_bounds = array<i64: 16, 64>}, {pipeline_mode = #tpu.pipeline_mode<synchronous>, transform_indices = @transform_11, window_bounds = array<i64: 1, 64>}, {pipeline_mode = #tpu.pipeline_mode<synchronous>, transform_indices = @transform_12, window_bounds = array<i64: 64, 32>}, {transform_indices = @transform_13, window_bounds = array<i64: 1, 8, 32>}]} {
    %c0_i32 = arith.constant 0 : i32
    %0 = arith.cmpi eq, %arg1, %c0_i32 : i32
    %1 = arith.extui %0 : i1 to i32
    %c0_i32_0 = arith.constant 0 : i32
    %2 = arith.cmpi ne, %1, %c0_i32_0 : i32
    scf.if %2 {
      %cst_131 = arith.constant 0.000000e+00 : f32
      %224 = vector.broadcast %cst_131 : f32 to vector<8x64xf32>
      %c0_132 = arith.constant 0 : index
      %c0_133 = arith.constant 0 : index
      %225 = vector.load %arg17[%c0_132, %c0_133] : memref<16x64xf32, #tpu.memory_space<vmem>>, vector<8x64xf32>
      tpu.vector_store %arg17[%c0_132, %c0_133], %224 {strides = array<i32>} : memref<16x64xf32, #tpu.memory_space<vmem>>, vector<8x64xf32>,
      %cst_134 = arith.constant 0.000000e+00 : f32
      %226 = vector.broadcast %cst_134 : f32 to vector<16x64xf32>
      %c0_135 = arith.constant 0 : index
      %c0_136 = arith.constant 0 : index
      %227 = vector.load %arg22[%c0_135, %c0_136] : memref<16x64xf32, #tpu.memory_space<vmem>>, vector<16x64xf32>
      tpu.vector_store %arg22[%c0_135, %c0_136], %226 {strides = array<i32>} : memref<16x64xf32, #tpu.memory_space<vmem>>, vector<16x64xf32>,
    } else {
    }
    %c0 = arith.constant 0 : index
    %c0_1 = arith.constant 0 : index
    %c0_2 = arith.constant 0 : index
    %3 = vector.load %arg2[%c0, %c0_1, %c0_2] : memref<1x8x32xf32, #tpu.memory_space<vmem>>, vector<1x8x32xf32>
    %4 = vector.shape_cast %3 : vector<1x8x32xf32> to vector<8x32xf32>
    %cst = arith.constant dense<0.000000e+00> : vector<8xf32>
    %5 = vector.multi_reduction <add>, %4, %cst [1] : vector<8x32xf32> to vector<8xf32>
    %6 = vector.shape_cast %5 : vector<8xf32> to vector<8x1xf32>
    %cst_3 = arith.constant 3.200000e+01 : f32
    %7 = vector.broadcast %cst_3 : f32 to vector<8x1xf32>
    %8 = arith.divf %6, %7 : vector<8x1xf32>
    %9 = vector.broadcast %8 : vector<8x1xf32> to vector<8x32xf32>
    %10 = arith.subf %4, %9 : vector<8x32xf32>
    %11 = arith.mulf %10, %10 : vector<8x32xf32>
    %cst_4 = arith.constant dense<0.000000e+00> : vector<8xf32>
    %12 = vector.multi_reduction <add>, %11, %cst_4 [1] : vector<8x32xf32> to vector<8xf32>
    %13 = vector.shape_cast %12 : vector<8xf32> to vector<8x1xf32>
    %cst_5 = arith.constant 3.200000e+01 : f32
    %14 = vector.broadcast %cst_5 : f32 to vector<8x1xf32>
    %15 = arith.divf %13, %14 : vector<8x1xf32>
    %16 = vector.broadcast %8 : vector<8x1xf32> to vector<8x32xf32>
    %17 = arith.subf %4, %16 : vector<8x32xf32>
    %cst_6 = arith.constant 9.99999974E-6 : f32
    %18 = vector.broadcast %cst_6 : f32 to vector<8x1xf32>
    %19 = arith.addf %15, %18 : vector<8x1xf32>
    %20 = math.rsqrt %19 : vector<8x1xf32>
    %21 = vector.broadcast %20 : vector<8x1xf32> to vector<8x32xf32>
    %22 = arith.mulf %17, %21 : vector<8x32xf32>
    %c0_7 = arith.constant 0 : index
    %c0_8 = arith.constant 0 : index
    %23 = vector.load %arg3[%c0_7, %c0_8] : memref<1x32xf32, #tpu.memory_space<vmem>>, vector<1x32xf32>
    %24 = vector.broadcast %23 : vector<1x32xf32> to vector<8x32xf32>
    %25 = arith.mulf %22, %24 : vector<8x32xf32>
    %c0_9 = arith.constant 0 : index
    %c0_10 = arith.constant 0 : index
    %26 = vector.load %arg4[%c0_9, %c0_10] : memref<1x32xf32, #tpu.memory_space<vmem>>, vector<1x32xf32>
    %27 = vector.broadcast %26 : vector<1x32xf32> to vector<8x32xf32>
    %28 = arith.addf %25, %27 : vector<8x32xf32>
    %c0_11 = arith.constant 0 : index
    %c0_12 = arith.constant 0 : index
    %29 = vector.load %arg16[%c0_11, %c0_12] : memref<8x32xf32, #tpu.memory_space<vmem>>, vector<8x32xf32>
    tpu.vector_store %arg16[%c0_11, %c0_12], %28 {strides = array<i32>} : memref<8x32xf32, #tpu.memory_space<vmem>>, vector<8x32xf32>,
    %c0_13 = arith.constant 0 : index
    %c0_14 = arith.constant 0 : index
    %30 = vector.load %arg5[%c0_13, %c0_14] : memref<32x64xf32, #tpu.memory_space<vmem>>, vector<32x64xf32>
    %cst_15 = arith.constant dense<0.000000e+00> : vector<8x64xf32>
    %31 = tpu.matmul %28, %30, %cst_15 {dimension_numbers = #tpu.dot_dimension_numbers<[1], [0], [0], [1], [0, 0, 1, 1], [], []>} : vector<8x32xf32>, vector<32x64xf32>, vector<8x64xf32> -> vector<8x64xf32>
    %c8 = arith.constant 8 : index
    %c0_16 = arith.constant 0 : index
    %32 = vector.load %arg17[%c8, %c0_16] : memref<16x64xf32, #tpu.memory_space<vmem>>, vector<8x64xf32>
    tpu.vector_store %arg17[%c8, %c0_16], %31 {strides = array<i32>} : memref<16x64xf32, #tpu.memory_space<vmem>>, vector<8x64xf32>,
    %c0_17 = arith.constant 0 : index
    %c0_18 = arith.constant 0 : index
    %33 = vector.load %arg8[%c0_17, %c0_18] : memref<1x64xf32, #tpu.memory_space<vmem>>, vector<1x64xf32>
    %c5 = arith.constant 5 : index
    %c0_19 = arith.constant 0 : index
    %34 = vector.load %arg17[%c5, %c0_19] : memref<16x64xf32, #tpu.memory_space<vmem>>, vector<8x64xf32>
    %c0_20 = arith.constant 0 : index
    %c0_21 = arith.constant 0 : index
    %35 = vector.load %arg7[%c0_20, %c0_21] : memref<4x64xf32, #tpu.memory_space<vmem>>, vector<1x64xf32>
    %36 = vector.broadcast %35 : vector<1x64xf32> to vector<8x64xf32>
    %37 = arith.mulf %34, %36 : vector<8x64xf32>
    %38 = vector.broadcast %33 : vector<1x64xf32> to vector<8x64xf32>
    %39 = arith.addf %38, %37 : vector<8x64xf32>
    %c6 = arith.constant 6 : index
    %c0_22 = arith.constant 0 : index
    %40 = vector.load %arg17[%c6, %c0_22] : memref<16x64xf32, #tpu.memory_space<vmem>>, vector<8x64xf32>
    %c1 = arith.constant 1 : index
    %c0_23 = arith.constant 0 : index
    %41 = vector.load %arg7[%c1, %c0_23] : memref<4x64xf32, #tpu.memory_space<vmem>>, vector<1x64xf32>
    %42 = vector.broadcast %41 : vector<1x64xf32> to vector<8x64xf32>
    %43 = arith.mulf %40, %42 : vector<8x64xf32>
    %44 = arith.addf %39, %43 : vector<8x64xf32>
    %c7 = arith.constant 7 : index
    %c0_24 = arith.constant 0 : index
    %45 = vector.load %arg17[%c7, %c0_24] : memref<16x64xf32, #tpu.memory_space<vmem>>, vector<8x64xf32>
    %c2 = arith.constant 2 : index
    %c0_25 = arith.constant 0 : index
    %46 = vector.load %arg7[%c2, %c0_25] : memref<4x64xf32, #tpu.memory_space<vmem>>, vector<1x64xf32>
    %47 = vector.broadcast %46 : vector<1x64xf32> to vector<8x64xf32>
    %48 = arith.mulf %45, %47 : vector<8x64xf32>
    %49 = arith.addf %44, %48 : vector<8x64xf32>
    %c8_26 = arith.constant 8 : index
    %c0_27 = arith.constant 0 : index
    %50 = vector.load %arg17[%c8_26, %c0_27] : memref<16x64xf32, #tpu.memory_space<vmem>>, vector<8x64xf32>
    %c3 = arith.constant 3 : index
    %c0_28 = arith.constant 0 : index
    %51 = vector.load %arg7[%c3, %c0_28] : memref<4x64xf32, #tpu.memory_space<vmem>>, vector<1x64xf32>
    %52 = vector.broadcast %51 : vector<1x64xf32> to vector<8x64xf32>
    %53 = arith.mulf %50, %52 : vector<8x64xf32>
    %54 = arith.addf %49, %53 : vector<8x64xf32>
    %cst_29 = arith.constant 0.000000e+00 : f32
    %55 = vector.broadcast %cst_29 : f32 to vector<8x64xf32>
    %56 = arith.subf %55, %54 : vector<8x64xf32>
    %57 = math.exp %56 : vector<8x64xf32>
    %cst_30 = arith.constant 1.000000e+00 : f32
    %58 = vector.broadcast %cst_30 : f32 to vector<8x64xf32>
    %59 = arith.addf %58, %57 : vector<8x64xf32>
    %60 = tpu.reciprocal %59 {approx = true} : vector<8x64xf32> -> vector<8x64xf32>
    %61 = arith.mulf %54, %60 : vector<8x64xf32>
    %c0_31 = arith.constant 0 : index
    %c0_32 = arith.constant 0 : index
    %62 = vector.load %arg18[%c0_31, %c0_32] : memref<8x64xf32, #tpu.memory_space<vmem>>, vector<8x64xf32>
    tpu.vector_store %arg18[%c0_31, %c0_32], %61 {strides = array<i32>} : memref<8x64xf32, #tpu.memory_space<vmem>>, vector<8x64xf32>,
    %c0_33 = arith.constant 0 : index
    %c0_34 = arith.constant 0 : index
    %63 = vector.load %arg9[%c0_33, %c0_34] : memref<64x272xf32, #tpu.memory_space<vmem>>, vector<64x272xf32>
    %cst_35 = arith.constant dense<0.000000e+00> : vector<8x272xf32>
    %64 = tpu.matmul %61, %63, %cst_35 {dimension_numbers = #tpu.dot_dimension_numbers<[1], [0], [0], [1], [0, 0, 1, 1], [], []>} : vector<8x64xf32>, vector<64x272xf32>, vector<8x272xf32> -> vector<8x272xf32>
    %65 = vector.extract_strided_slice %64 {offsets = [0, 0], sizes = [8, 2], strides = [1, 1]} : vector<8x272xf32> to vector<8x2xf32>
    %66 = vector.extract_strided_slice %64 {offsets = [0, 128], sizes = [8, 16], strides = [1, 1]} : vector<8x272xf32> to vector<8x16xf32>
    %67 = vector.extract_strided_slice %64 {offsets = [0, 256], sizes = [8, 16], strides = [1, 1]} : vector<8x272xf32> to vector<8x16xf32>
    %c0_36 = arith.constant 0 : index
    %c0_37 = arith.constant 0 : index
    %68 = vector.load %arg19[%c0_36, %c0_37] : memref<8x16xf32, #tpu.memory_space<vmem>>, vector<8x16xf32>
    tpu.vector_store %arg19[%c0_36, %c0_37], %67 {strides = array<i32>} : memref<8x16xf32, #tpu.memory_space<vmem>>, vector<8x16xf32>,
    %69 = vector.extract_strided_slice %65 {offsets = [0, 0], sizes = [8, 1], strides = [1, 1]} : vector<8x2xf32> to vector<8x1xf32>
    %c0_38 = arith.constant 0 : index
    %c0_39 = arith.constant 0 : index
    %70 = vector.load %arg10[%c0_38, %c0_39] : memref<2x64xf32, #tpu.memory_space<vmem>>, vector<1x64xf32>
    %71 = vector.broadcast %69 : vector<8x1xf32> to vector<8x64xf32>
    %72 = vector.broadcast %70 : vector<1x64xf32> to vector<8x64xf32>
    %73 = arith.mulf %71, %72 : vector<8x64xf32>
    %c0_40 = arith.constant 0 : index
    %c0_41 = arith.constant 0 : index
    %74 = vector.load %arg11[%c0_40, %c0_41] : memref<1x64xf32, #tpu.memory_space<vmem>>, vector<1x64xf32>
    %75 = vector.broadcast %74 : vector<1x64xf32> to vector<8x64xf32>
    %76 = arith.addf %73, %75 : vector<8x64xf32>
    %77 = vector.extract_strided_slice %65 {offsets = [0, 1], sizes = [8, 1], strides = [1, 1]} : vector<8x2xf32> to vector<8x1xf32>
    %c1_42 = arith.constant 1 : index
    %c0_43 = arith.constant 0 : index
    %78 = vector.load %arg10[%c1_42, %c0_43] : memref<2x64xf32, #tpu.memory_space<vmem>>, vector<1x64xf32>
    %79 = vector.broadcast %77 : vector<8x1xf32> to vector<8x64xf32>
    %80 = vector.broadcast %78 : vector<1x64xf32> to vector<8x64xf32>
    %81 = arith.mulf %79, %80 : vector<8x64xf32>
    %82 = arith.addf %76, %81 : vector<8x64xf32>
    %cst_44 = arith.constant 0.000000e+00 : f32
    %83 = vector.broadcast %cst_44 : f32 to vector<8x64xf32>
    %84 = arith.maximumf %82, %83 : vector<8x64xf32>
    %85 = math.absf %82 : vector<8x64xf32>
    %cst_45 = arith.constant 0.000000e+00 : f32
    %86 = vector.broadcast %cst_45 : f32 to vector<8x64xf32>
    %87 = arith.subf %86, %85 : vector<8x64xf32>
    %88 = math.exp %87 : vector<8x64xf32>
    %89 = math.log1p %88 : vector<8x64xf32>
    %90 = arith.addf %84, %89 : vector<8x64xf32>
    %91 = vector.shape_cast %90 : vector<8x64xf32> to vector<8x1x64xf32>
    %c0_46 = arith.constant 0 : index
    %c0_47 = arith.constant 0 : index
    %92 = vector.load %arg12[%c0_46, %c0_47] : memref<16x64xf32, #tpu.memory_space<vmem>>, vector<16x64xf32>
    %93 = vector.shape_cast %92 : vector<16x64xf32> to vector<1x16x64xf32>
    %94 = vector.broadcast %91 : vector<8x1x64xf32> to vector<8x16x64xf32>
    %95 = vector.broadcast %93 : vector<1x16x64xf32> to vector<8x16x64xf32>
    %96 = arith.mulf %94, %95 : vector<8x16x64xf32>
    %97 = math.exp %96 : vector<8x16x64xf32>
    %c0_48 = arith.constant 0 : index
    %c0_49 = arith.constant 0 : index
    %c0_50 = arith.constant 0 : index
    %98 = vector.load %arg20[%c0_48, %c0_49, %c0_50] : memref<8x16x64xf32, #tpu.memory_space<vmem>>, vector<8x16x64xf32>
    tpu.vector_store %arg20[%c0_48, %c0_49, %c0_50], %97 {strides = array<i32>} : memref<8x16x64xf32, #tpu.memory_space<vmem>>, vector<8x16x64xf32>,
    %99 = arith.mulf %90, %61 : vector<8x64xf32>
    %100 = vector.shape_cast %99 : vector<8x64xf32> to vector<8x1x64xf32>
    %101 = vector.shape_cast %66 : vector<8x16xf32> to vector<8x16x1xf32>
    %102 = vector.broadcast %100 : vector<8x1x64xf32> to vector<8x16x64xf32>
    %103 = vector.broadcast %101 : vector<8x16x1xf32> to vector<8x16x64xf32>
    %104 = arith.mulf %102, %103 : vector<8x16x64xf32>
    %c0_51 = arith.constant 0 : index
    %c0_52 = arith.constant 0 : index
    %c0_53 = arith.constant 0 : index
    %105 = vector.load %arg21[%c0_51, %c0_52, %c0_53] : memref<8x16x64xf32, #tpu.memory_space<vmem>>, vector<8x16x64xf32>
    tpu.vector_store %arg21[%c0_51, %c0_52, %c0_53], %104 {strides = array<i32>} : memref<8x16x64xf32, #tpu.memory_space<vmem>>, vector<8x16x64xf32>,
    %c0_54 = arith.constant 0 : index
    %c0_55 = arith.constant 0 : index
    %106 = vector.load %arg22[%c0_54, %c0_55] : memref<16x64xf32, #tpu.memory_space<vmem>>, vector<16x64xf32>
    %c0_i32_56 = arith.constant 0 : i32
    %107 = arith.index_cast %c0_i32_56 : i32 to index
    %c0_57 = arith.constant 0 : index
    %c0_58 = arith.constant 0 : index
    %108 = vector.load %arg20[%107, %c0_57, %c0_58] : memref<8x16x64xf32, #tpu.memory_space<vmem>>, vector<1x16x64xf32>
    %109 = vector.shape_cast %108 : vector<1x16x64xf32> to vector<16x64xf32>
    %110 = arith.index_cast %c0_i32_56 : i32 to index
    %c0_59 = arith.constant 0 : index
    %c0_60 = arith.constant 0 : index
    %111 = vector.load %arg21[%110, %c0_59, %c0_60] : memref<8x16x64xf32, #tpu.memory_space<vmem>>, vector<1x16x64xf32>
    %112 = vector.shape_cast %111 : vector<1x16x64xf32> to vector<16x64xf32>
    %113 = arith.mulf %109, %106 : vector<16x64xf32>
    %114 = arith.addf %113, %112 : vector<16x64xf32>
    %115 = vector.shape_cast %114 : vector<16x64xf32> to vector<1x16x64xf32>
    %116 = arith.index_cast %c0_i32_56 : i32 to index
    %c0_61 = arith.constant 0 : index
    %c0_62 = arith.constant 0 : index
    %117 = vector.load %arg21[%116, %c0_61, %c0_62] : memref<8x16x64xf32, #tpu.memory_space<vmem>>, vector<1x16x64xf32>
    tpu.vector_store %arg21[%116, %c0_61, %c0_62], %115 {strides = array<i32>} : memref<8x16x64xf32, #tpu.memory_space<vmem>>, vector<1x16x64xf32>,
    %c1_i32 = arith.constant 1 : i32
    %118 = arith.index_cast %c1_i32 : i32 to index
    %c0_63 = arith.constant 0 : index
    %c0_64 = arith.constant 0 : index
    %119 = vector.load %arg20[%118, %c0_63, %c0_64] : memref<8x16x64xf32, #tpu.memory_space<vmem>>, vector<1x16x64xf32>
    %120 = vector.shape_cast %119 : vector<1x16x64xf32> to vector<16x64xf32>
    %121 = arith.index_cast %c1_i32 : i32 to index
    %c0_65 = arith.constant 0 : index
    %c0_66 = arith.constant 0 : index
    %122 = vector.load %arg21[%121, %c0_65, %c0_66] : memref<8x16x64xf32, #tpu.memory_space<vmem>>, vector<1x16x64xf32>
    %123 = vector.shape_cast %122 : vector<1x16x64xf32> to vector<16x64xf32>
    %124 = arith.mulf %120, %114 : vector<16x64xf32>
    %125 = arith.addf %124, %123 : vector<16x64xf32>
    %126 = vector.shape_cast %125 : vector<16x64xf32> to vector<1x16x64xf32>
    %127 = arith.index_cast %c1_i32 : i32 to index
    %c0_67 = arith.constant 0 : index
    %c0_68 = arith.constant 0 : index
    %128 = vector.load %arg21[%127, %c0_67, %c0_68] : memref<8x16x64xf32, #tpu.memory_space<vmem>>, vector<1x16x64xf32>
    tpu.vector_store %arg21[%127, %c0_67, %c0_68], %126 {strides = array<i32>} : memref<8x16x64xf32, #tpu.memory_space<vmem>>, vector<1x16x64xf32>,
    %c2_i32 = arith.constant 2 : i32
    %129 = arith.index_cast %c2_i32 : i32 to index
    %c0_69 = arith.constant 0 : index
    %c0_70 = arith.constant 0 : index
    %130 = vector.load %arg20[%129, %c0_69, %c0_70] : memref<8x16x64xf32, #tpu.memory_space<vmem>>, vector<1x16x64xf32>
    %131 = vector.shape_cast %130 : vector<1x16x64xf32> to vector<16x64xf32>
    %132 = arith.index_cast %c2_i32 : i32 to index
    %c0_71 = arith.constant 0 : index
    %c0_72 = arith.constant 0 : index
    %133 = vector.load %arg21[%132, %c0_71, %c0_72] : memref<8x16x64xf32, #tpu.memory_space<vmem>>, vector<1x16x64xf32>
    %134 = vector.shape_cast %133 : vector<1x16x64xf32> to vector<16x64xf32>
    %135 = arith.mulf %131, %125 : vector<16x64xf32>
    %136 = arith.addf %135, %134 : vector<16x64xf32>
    %137 = vector.shape_cast %136 : vector<16x64xf32> to vector<1x16x64xf32>
    %138 = arith.index_cast %c2_i32 : i32 to index
    %c0_73 = arith.constant 0 : index
    %c0_74 = arith.constant 0 : index
    %139 = vector.load %arg21[%138, %c0_73, %c0_74] : memref<8x16x64xf32, #tpu.memory_space<vmem>>, vector<1x16x64xf32>
    tpu.vector_store %arg21[%138, %c0_73, %c0_74], %137 {strides = array<i32>} : memref<8x16x64xf32, #tpu.memory_space<vmem>>, vector<1x16x64xf32>,
    %c3_i32 = arith.constant 3 : i32
    %140 = arith.index_cast %c3_i32 : i32 to index
    %c0_75 = arith.constant 0 : index
    %c0_76 = arith.constant 0 : index
    %141 = vector.load %arg20[%140, %c0_75, %c0_76] : memref<8x16x64xf32, #tpu.memory_space<vmem>>, vector<1x16x64xf32>
    %142 = vector.shape_cast %141 : vector<1x16x64xf32> to vector<16x64xf32>
    %143 = arith.index_cast %c3_i32 : i32 to index
    %c0_77 = arith.constant 0 : index
    %c0_78 = arith.constant 0 : index
    %144 = vector.load %arg21[%143, %c0_77, %c0_78] : memref<8x16x64xf32, #tpu.memory_space<vmem>>, vector<1x16x64xf32>
    %145 = vector.shape_cast %144 : vector<1x16x64xf32> to vector<16x64xf32>
    %146 = arith.mulf %142, %136 : vector<16x64xf32>
    %147 = arith.addf %146, %145 : vector<16x64xf32>
    %148 = vector.shape_cast %147 : vector<16x64xf32> to vector<1x16x64xf32>
    %149 = arith.index_cast %c3_i32 : i32 to index
    %c0_79 = arith.constant 0 : index
    %c0_80 = arith.constant 0 : index
    %150 = vector.load %arg21[%149, %c0_79, %c0_80] : memref<8x16x64xf32, #tpu.memory_space<vmem>>, vector<1x16x64xf32>
    tpu.vector_store %arg21[%149, %c0_79, %c0_80], %148 {strides = array<i32>} : memref<8x16x64xf32, #tpu.memory_space<vmem>>, vector<1x16x64xf32>,
    %c4_i32 = arith.constant 4 : i32
    %151 = arith.index_cast %c4_i32 : i32 to index
    %c0_81 = arith.constant 0 : index
    %c0_82 = arith.constant 0 : index
    %152 = vector.load %arg20[%151, %c0_81, %c0_82] : memref<8x16x64xf32, #tpu.memory_space<vmem>>, vector<1x16x64xf32>
    %153 = vector.shape_cast %152 : vector<1x16x64xf32> to vector<16x64xf32>
    %154 = arith.index_cast %c4_i32 : i32 to index
    %c0_83 = arith.constant 0 : index
    %c0_84 = arith.constant 0 : index
    %155 = vector.load %arg21[%154, %c0_83, %c0_84] : memref<8x16x64xf32, #tpu.memory_space<vmem>>, vector<1x16x64xf32>
    %156 = vector.shape_cast %155 : vector<1x16x64xf32> to vector<16x64xf32>
    %157 = arith.mulf %153, %147 : vector<16x64xf32>
    %158 = arith.addf %157, %156 : vector<16x64xf32>
    %159 = vector.shape_cast %158 : vector<16x64xf32> to vector<1x16x64xf32>
    %160 = arith.index_cast %c4_i32 : i32 to index
    %c0_85 = arith.constant 0 : index
    %c0_86 = arith.constant 0 : index
    %161 = vector.load %arg21[%160, %c0_85, %c0_86] : memref<8x16x64xf32, #tpu.memory_space<vmem>>, vector<1x16x64xf32>
    tpu.vector_store %arg21[%160, %c0_85, %c0_86], %159 {strides = array<i32>} : memref<8x16x64xf32, #tpu.memory_space<vmem>>, vector<1x16x64xf32>,
    %c5_i32 = arith.constant 5 : i32
    %162 = arith.index_cast %c5_i32 : i32 to index
    %c0_87 = arith.constant 0 : index
    %c0_88 = arith.constant 0 : index
    %163 = vector.load %arg20[%162, %c0_87, %c0_88] : memref<8x16x64xf32, #tpu.memory_space<vmem>>, vector<1x16x64xf32>
    %164 = vector.shape_cast %163 : vector<1x16x64xf32> to vector<16x64xf32>
    %165 = arith.index_cast %c5_i32 : i32 to index
    %c0_89 = arith.constant 0 : index
    %c0_90 = arith.constant 0 : index
    %166 = vector.load %arg21[%165, %c0_89, %c0_90] : memref<8x16x64xf32, #tpu.memory_space<vmem>>, vector<1x16x64xf32>
    %167 = vector.shape_cast %166 : vector<1x16x64xf32> to vector<16x64xf32>
    %168 = arith.mulf %164, %158 : vector<16x64xf32>
    %169 = arith.addf %168, %167 : vector<16x64xf32>
    %170 = vector.shape_cast %169 : vector<16x64xf32> to vector<1x16x64xf32>
    %171 = arith.index_cast %c5_i32 : i32 to index
    %c0_91 = arith.constant 0 : index
    %c0_92 = arith.constant 0 : index
    %172 = vector.load %arg21[%171, %c0_91, %c0_92] : memref<8x16x64xf32, #tpu.memory_space<vmem>>, vector<1x16x64xf32>
    tpu.vector_store %arg21[%171, %c0_91, %c0_92], %170 {strides = array<i32>} : memref<8x16x64xf32, #tpu.memory_space<vmem>>, vector<1x16x64xf32>,
    %c6_i32 = arith.constant 6 : i32
    %173 = arith.index_cast %c6_i32 : i32 to index
    %c0_93 = arith.constant 0 : index
    %c0_94 = arith.constant 0 : index
    %174 = vector.load %arg20[%173, %c0_93, %c0_94] : memref<8x16x64xf32, #tpu.memory_space<vmem>>, vector<1x16x64xf32>
    %175 = vector.shape_cast %174 : vector<1x16x64xf32> to vector<16x64xf32>
    %176 = arith.index_cast %c6_i32 : i32 to index
    %c0_95 = arith.constant 0 : index
    %c0_96 = arith.constant 0 : index
    %177 = vector.load %arg21[%176, %c0_95, %c0_96] : memref<8x16x64xf32, #tpu.memory_space<vmem>>, vector<1x16x64xf32>
    %178 = vector.shape_cast %177 : vector<1x16x64xf32> to vector<16x64xf32>
    %179 = arith.mulf %175, %169 : vector<16x64xf32>
    %180 = arith.addf %179, %178 : vector<16x64xf32>
    %181 = vector.shape_cast %180 : vector<16x64xf32> to vector<1x16x64xf32>
    %182 = arith.index_cast %c6_i32 : i32 to index
    %c0_97 = arith.constant 0 : index
    %c0_98 = arith.constant 0 : index
    %183 = vector.load %arg21[%182, %c0_97, %c0_98] : memref<8x16x64xf32, #tpu.memory_space<vmem>>, vector<1x16x64xf32>
    tpu.vector_store %arg21[%182, %c0_97, %c0_98], %181 {strides = array<i32>} : memref<8x16x64xf32, #tpu.memory_space<vmem>>, vector<1x16x64xf32>,
    %c7_i32 = arith.constant 7 : i32
    %184 = arith.index_cast %c7_i32 : i32 to index
    %c0_99 = arith.constant 0 : index
    %c0_100 = arith.constant 0 : index
    %185 = vector.load %arg20[%184, %c0_99, %c0_100] : memref<8x16x64xf32, #tpu.memory_space<vmem>>, vector<1x16x64xf32>
    %186 = vector.shape_cast %185 : vector<1x16x64xf32> to vector<16x64xf32>
    %187 = arith.index_cast %c7_i32 : i32 to index
    %c0_101 = arith.constant 0 : index
    %c0_102 = arith.constant 0 : index
    %188 = vector.load %arg21[%187, %c0_101, %c0_102] : memref<8x16x64xf32, #tpu.memory_space<vmem>>, vector<1x16x64xf32>
    %189 = vector.shape_cast %188 : vector<1x16x64xf32> to vector<16x64xf32>
    %190 = arith.mulf %186, %180 : vector<16x64xf32>
    %191 = arith.addf %190, %189 : vector<16x64xf32>
    %192 = vector.shape_cast %191 : vector<16x64xf32> to vector<1x16x64xf32>
    %193 = arith.index_cast %c7_i32 : i32 to index
    %c0_103 = arith.constant 0 : index
    %c0_104 = arith.constant 0 : index
    %194 = vector.load %arg21[%193, %c0_103, %c0_104] : memref<8x16x64xf32, #tpu.memory_space<vmem>>, vector<1x16x64xf32>
    tpu.vector_store %arg21[%193, %c0_103, %c0_104], %192 {strides = array<i32>} : memref<8x16x64xf32, #tpu.memory_space<vmem>>, vector<1x16x64xf32>,
    %c8_i32 = arith.constant 8 : i32
    %c0_105 = arith.constant 0 : index
    %c0_106 = arith.constant 0 : index
    %195 = vector.load %arg18[%c0_105, %c0_106] : memref<8x64xf32, #tpu.memory_space<vmem>>, vector<8x64xf32>
    %c0_107 = arith.constant 0 : index
    %c0_108 = arith.constant 0 : index
    %196 = vector.load %arg13[%c0_107, %c0_108] : memref<1x64xf32, #tpu.memory_space<vmem>>, vector<1x64xf32>
    %197 = vector.broadcast %196 : vector<1x64xf32> to vector<8x64xf32>
    %198 = arith.mulf %195, %197 : vector<8x64xf32>
    %c0_109 = arith.constant 0 : index
    %c0_110 = arith.constant 0 : index
    %c0_111 = arith.constant 0 : index
    %199 = vector.load %arg21[%c0_109, %c0_110, %c0_111] : memref<8x16x64xf32, #tpu.memory_space<vmem>>, vector<8x16x64xf32>
    %c0_112 = arith.constant 0 : index
    %c0_113 = arith.constant 0 : index
    %200 = vector.load %arg19[%c0_112, %c0_113] : memref<8x16xf32, #tpu.memory_space<vmem>>, vector<8x16xf32>
    %201 = vector.shape_cast %200 : vector<8x16xf32> to vector<8x16x1xf32>
    %202 = vector.broadcast %201 : vector<8x16x1xf32> to vector<8x16x64xf32>
    %203 = arith.mulf %199, %202 : vector<8x16x64xf32>
    %cst_114 = arith.constant dense<0.000000e+00> : vector<8x64xf32>
    %204 = vector.multi_reduction <add>, %203, %cst_114 [1] : vector<8x16x64xf32> to vector<8x64xf32>
    %205 = arith.addf %198, %204 : vector<8x64xf32>
    %c0_115 = arith.constant 0 : index
    %c0_116 = arith.constant 0 : index
    %206 = vector.load %arg16[%c0_115, %c0_116] : memref<8x32xf32, #tpu.memory_space<vmem>>, vector<8x32xf32>
    %c0_117 = arith.constant 0 : index
    %c0_118 = arith.constant 0 : index
    %207 = vector.load %arg6[%c0_117, %c0_118] : memref<32x64xf32, #tpu.memory_space<vmem>>, vector<32x64xf32>
    %cst_119 = arith.constant dense<0.000000e+00> : vector<8x64xf32>
    %208 = tpu.matmul %206, %207, %cst_119 {dimension_numbers = #tpu.dot_dimension_numbers<[1], [0], [0], [1], [0, 0, 1, 1], [], []>} : vector<8x32xf32>, vector<32x64xf32>, vector<8x64xf32> -> vector<8x64xf32>
    %cst_120 = arith.constant 0.000000e+00 : f32
    %209 = vector.broadcast %cst_120 : f32 to vector<8x64xf32>
    %210 = arith.subf %209, %208 : vector<8x64xf32>
    %211 = math.exp %210 : vector<8x64xf32>
    %cst_121 = arith.constant 1.000000e+00 : f32
    %212 = vector.broadcast %cst_121 : f32 to vector<8x64xf32>
    %213 = arith.addf %212, %211 : vector<8x64xf32>
    %214 = tpu.reciprocal %213 {approx = true} : vector<8x64xf32> -> vector<8x64xf32>
    %215 = arith.mulf %208, %214 : vector<8x64xf32>
    %216 = arith.mulf %205, %215 : vector<8x64xf32>
    %c0_122 = arith.constant 0 : index
    %c0_123 = arith.constant 0 : index
    %c0_124 = arith.constant 0 : index
    %217 = vector.load %arg2[%c0_122, %c0_123, %c0_124] : memref<1x8x32xf32, #tpu.memory_space<vmem>>, vector<1x8x32xf32>
    %218 = vector.shape_cast %217 : vector<1x8x32xf32> to vector<8x32xf32>
    %c0_125 = arith.constant 0 : index
    %c0_126 = arith.constant 0 : index
    %219 = vector.load %arg14[%c0_125, %c0_126] : memref<64x32xf32, #tpu.memory_space<vmem>>, vector<64x32xf32>
    %cst_127 = arith.constant dense<0.000000e+00> : vector<8x32xf32>
    %220 = tpu.matmul %216, %219, %cst_127 {dimension_numbers = #tpu.dot_dimension_numbers<[1], [0], [0], [1], [0, 0, 1, 1], [], []>} : vector<8x64xf32>, vector<64x32xf32>, vector<8x32xf32> -> vector<8x32xf32>
    %221 = arith.addf %218, %220 : vector<8x32xf32>
    %222 = vector.shape_cast %221 : vector<8x32xf32> to vector<1x8x32xf32>
    %c0_128 = arith.constant 0 : index
    %c0_129 = arith.constant 0 : index
    %c0_130 = arith.constant 0 : index
    %223 = vector.load %arg15[%c0_128, %c0_129, %c0_130] : memref<1x8x32xf32, #tpu.memory_space<vmem>>, vector<1x8x32xf32>
    tpu.vector_store %arg15[%c0_128, %c0_129, %c0_130], %222 {strides = array<i32>} : memref<1x8x32xf32, #tpu.memory_space<vmem>>, vector<1x8x32xf32>,
    return
  }
  func.func @transform_0(%arg0: i32, %arg1: i32) -> (i32, i32, i32) {
    %c0_i32 = arith.constant 0 : i32
    %c0_i32_0 = arith.constant 0 : i32
    return %arg0, %arg1, %c0_i32 : i32, i32, i32
  }
  func.func @transform_1(%arg0: i32, %arg1: i32) -> (i32, i32) {
    %c0_i32 = arith.constant 0 : i32
    %c0_i32_0 = arith.constant 0 : i32
    %c0_i32_1 = arith.constant 0 : i32
    return %c0_i32, %c0_i32_0 : i32, i32
  }
  func.func @transform_2(%arg0: i32, %arg1: i32) -> (i32, i32) {
    %c0_i32 = arith.constant 0 : i32
    %c0_i32_0 = arith.constant 0 : i32
    %c0_i32_1 = arith.constant 0 : i32
    return %c0_i32, %c0_i32_0 : i32, i32
  }
  func.func @transform_3(%arg0: i32, %arg1: i32) -> (i32, i32) {
    %c0_i32 = arith.constant 0 : i32
    %c0_i32_0 = arith.constant 0 : i32
    %c0_i32_1 = arith.constant 0 : i32
    return %c0_i32, %c0_i32_0 : i32, i32
  }
  func.func @transform_4(%arg0: i32, %arg1: i32) -> (i32, i32) {
    %c0_i32 = arith.constant 0 : i32
    %c0_i32_0 = arith.constant 0 : i32
    %c0_i32_1 = arith.constant 0 : i32
    return %c0_i32, %c0_i32_0 : i32, i32
  }
  func.func @transform_5(%arg0: i32, %arg1: i32) -> (i32, i32) {
    %c0_i32 = arith.constant 0 : i32
    %c0_i32_0 = arith.constant 0 : i32
    %c0_i32_1 = arith.constant 0 : i32
    return %c0_i32, %c0_i32_0 : i32, i32
  }
  func.func @transform_6(%arg0: i32, %arg1: i32) -> (i32, i32) {
    %c0_i32 = arith.constant 0 : i32
    %c0_i32_0 = arith.constant 0 : i32
    %c0_i32_1 = arith.constant 0 : i32
    return %c0_i32, %c0_i32_0 : i32, i32
  }
  func.func @transform_7(%arg0: i32, %arg1: i32) -> (i32, i32) {
    %c0_i32 = arith.constant 0 : i32
    %c0_i32_0 = arith.constant 0 : i32
    %c0_i32_1 = arith.constant 0 : i32
    return %c0_i32, %c0_i32_0 : i32, i32
  }
  func.func @transform_8(%arg0: i32, %arg1: i32) -> (i32, i32) {
    %c0_i32 = arith.constant 0 : i32
    %c0_i32_0 = arith.constant 0 : i32
    %c0_i32_1 = arith.constant 0 : i32
    return %c0_i32, %c0_i32_0 : i32, i32
  }
  func.func @transform_9(%arg0: i32, %arg1: i32) -> (i32, i32) {
    %c0_i32 = arith.constant 0 : i32
    %c0_i32_0 = arith.constant 0 : i32
    %c0_i32_1 = arith.constant 0 : i32
    return %c0_i32, %c0_i32_0 : i32, i32
  }
  func.func @transform_10(%arg0: i32, %arg1: i32) -> (i32, i32) {
    %c0_i32 = arith.constant 0 : i32
    %c0_i32_0 = arith.constant 0 : i32
    %c0_i32_1 = arith.constant 0 : i32
    return %c0_i32, %c0_i32_0 : i32, i32
  }
  func.func @transform_11(%arg0: i32, %arg1: i32) -> (i32, i32) {
    %c0_i32 = arith.constant 0 : i32
    %c0_i32_0 = arith.constant 0 : i32
    %c0_i32_1 = arith.constant 0 : i32
    return %c0_i32, %c0_i32_0 : i32, i32
  }
  func.func @transform_12(%arg0: i32, %arg1: i32) -> (i32, i32) {
    %c0_i32 = arith.constant 0 : i32
    %c0_i32_0 = arith.constant 0 : i32
    %c0_i32_1 = arith.constant 0 : i32
    return %c0_i32, %c0_i32_0 : i32, i32
  }
  func.func @transform_13(%arg0: i32, %arg1: i32) -> (i32, i32, i32) {
    %c0_i32 = arith.constant 0 : i32
    %c0_i32_0 = arith.constant 0 : i32
    return %arg0, %arg1, %c0_i32 : i32, i32, i32
  }
}

</mosaic_0001>

<bundles_post_ra>
// kernel: mamba_traj_encoder_forward.9
= control target key start
LH: loop header
LB: loop body
LE: loop exit
PB: predicated region body
PF: predicated region fallthrough
CT: control target
= control target key end

     0   :  { %vm17_vm0 = vcmask 261120   ;;  %s184_s0 = inlined_call_operand.vmem [shape: f32[16,32], index: 0, kind: input, shape index: {}]   ;;  %s185_s1 = inlined_call_operand.vmem [shape: f32[1,32], index: 1, kind: input, shape index: {}]   ;;  %s186_s2 = inlined_call_operand.vmem [shape: f32[1,32], index: 2, kind: input, shape index: {}]   ;;  %s187_s3 = inlined_call_operand.hbm [shape: f32[16,32], index: 3, kind: output, shape index: {}]  }
   0x1   :  { %v15_v0 = vld [vmem:[%s184_s0] sm:$0xff] }
   0x2   :  { %v18_v1 = vsel %vm17_vm0, %v15_v0, 0.0 }
   0x3   :  { %8 = vsyncpa [#allocation3], 0  ;;  %19 = vadd.xlane.f32.xlu0 %v18_v1  ;;  %v16_v2 = vld [vmem:[%s184_s0 + $0x8] sm:$0xff]  ;;  %v139_v4 = vmov 32.0   ;;  %v105_v35 = vld [vmem:[%s185_s1] ss:$0 sm:$0xff] }
   0x4   :  { %v21_v3 = vsel %vm17_vm0, %v16_v2, 0.0  ;;  %107 = vrcp.f32 %v139_v4  ;;  %v106_v39 = vld [vmem:[%s186_s2] ss:$0 sm:$0xff]  ;;  %s140_s1 = smov [#allocation2]   ;;  %s89_s22 = sshll.u32 %s187_s3, 4  ;;  %s90_s22 = int_to_ptr.hbm [resolvable:$true] %s89_s22 }
   0x5   :  { %s87_s19 = sshll.u32 %s140_s1, 4  ;;  %s141_s2 = smov 128   ;;  %s88_s19 = int_to_ptr.vmem [resolvable:$true] %s87_s19 }
   0x6   :  { %s142_s23 = smov 8  }
   0xa   :  { %v108_v5 = vpop.eup %107 }
   0xb   :  { %22 = vadd.xlane.f32.xlu0 %v21_v3  ;;  %v25_v6 = vmul.f32 32.0, %v108_v5  ;;  %vm29_vm1 = vweird.f32 %v108_v5 }
   0xd   :  { %v26_v7 = vsub.f32 1.0, %v25_v6 }
   0xf   :  { %v27_v8 = vmul.f32 %v108_v5, %v26_v7 }
  0x11   :  { %v28_v9 = vadd.f32 %v108_v5, %v27_v8 }
  0x13   :  { %v30_v10 = vsel %vm29_vm1, %v108_v5, %v28_v9 }
  0x76   :  { %v20_v11 = vpop.xlane.xlu0 %19 }
  0x77   :  { %v31_v12 = vmul.f32 %v30_v10, %v20_v11 }
  0x79   :  { %v33_v13 = vsub.f32 %v15_v0, %v31_v12 }
  0x7b   :  { %v35_v14 = vmul.f32 %v33_v13, %v33_v13 }
  0x7d   :  { %v37_v15 = vsel %vm17_vm0, %v35_v14, 0.0 }
  0x7e   :  { %38 = vadd.xlane.f32.xlu1 %v37_v15  ;;  %v23_v16 = vpop.xlane.xlu0 %22 }
  0x7f   :  { %v32_v17 = vmul.f32 %v30_v10, %v23_v16 }
  0x81   :  { %v34_v18 = vsub.f32 %v16_v2, %v32_v17 }
  0x83   :  { %v36_v19 = vmul.f32 %v34_v18, %v34_v18 }
  0x85   :  { %v40_v20 = vsel %vm17_vm0, %v36_v19, 0.0 }
  0x86   :  { %41 = vadd.xlane.f32.xlu1 %v40_v20 }
  0xf1   :  { %v39_v21 = vpop.xlane.xlu1 %38 }
  0xf2   :  { %v43_v22 = vmul.f32 %v39_v21, %v30_v10 }
  0xf4   :  { %v45_v23 = vadd.f32 1e-05, %v43_v22 }
  0xf6   :  { %109 = vrsqrt.f32 %v45_v23  ;;  %vm53_vm3 = vweird.f32 %v45_v23 }
  0xf9   :  { %v42_v24 = vpop.xlane.xlu1 %41 }
  0xfa   :  { %v44_v25 = vmul.f32 %v42_v24, %v30_v10 }
  0xfc   :  { %v110_v26 = vpop.eup %109  ;;  %v46_v27 = vadd.f32 1e-05, %v44_v25 }
  0xfd   :  { %v48_v28 = vmul.f32 %v110_v26, %v45_v23  ;;  %vm54_vm2 = vweird.f32 %v110_v26 }
  0xfe   :  { %111 = vrsqrt.f32 %v46_v27  ;;  %vm55_vm4 = vmor %vm53_vm3, %vm54_vm2  ;;  %vm63_vm6 = vweird.f32 %v46_v27 }
  0xff   :  { %v49_v29 = vmul.f32 %v110_v26, %v48_v28 }
 0x101   :  { %v50_v30 = vmul.f32 0.5, %v49_v29 }
 0x103   :  { %v51_v31 = vsub.f32 1.5, %v50_v30 }
 0x104   :  { %v112_v32 = vpop.eup %111 }
 0x105   :  { %v52_v33 = vmul.f32 %v110_v26, %v51_v31  ;;  %v58_v34 = vmul.f32 %v112_v32, %v46_v27  ;;  %vm64_vm5 = vweird.f32 %v112_v32 }
 0x106   :  { %vm65_vm7 = vmor %vm63_vm6, %vm64_vm5 }
 0x107   :  { %v56_v36 = vsel %vm55_vm4, %v110_v26, %v52_v33  ;;  %v59_v37 = vmul.f32 %v112_v32, %v58_v34 }
 0x108   :  { %v67_v38 = vmul.f32 %v56_v36, %v33_v13 }
 0x109   :  { %v60_v40 = vmul.f32 0.5, %v59_v37 }
 0x10a   :  { %v73_v41 = vmul.f32 %v105_v35, %v67_v38 }
 0x10b   :  { %v61_v42 = vsub.f32 1.5, %v60_v40 }
 0x10c   :  { %v79_v43 = vadd.f32 %v106_v39, %v73_v41 }
 0x10d   :  { %v62_v44 = vmul.f32 %v112_v32, %v61_v42 }
 0x10e   :  { %81 = vst.msk [vmem:[#allocation2] sm:$0xff] %vm17_vm0, %v79_v43 }
 0x10f   :  { %v66_v45 = vsel %vm65_vm7, %v112_v32, %v62_v44 }
 0x110   :  { %v68_v46 = vmul.f32 %v66_v45, %v34_v18 }
 0x112   :  { %v74_v47 = vmul.f32 %v105_v35, %v68_v46 }
 0x114   :  { %v80_v48 = vadd.f32 %v106_v39, %v74_v47 }
 0x116   :  { %82 = vst.msk [vmem:[#allocation2 + $0x8] sm:$0xff] %vm17_vm0, %v80_v48 }
 0x117   :  { %95 = dma.vmem_to_hbm [thread:$0]  %s88_s19, 256, %s90_s22, [#allocation3], %s141_s2, %s141_s2, %s142_s23  }
 0x118   :  { %137 = dma.done.wait [#allocation3], 256  }
 0x119   :  { %138 = vsyncadd [#allocation3], 4294967040 }
 0x11a   :  { %100 = vsyncpa [#allocation3], 1 }

// kernel: mamba_traj_encoder_forward.5
= control target key start
LH: loop header
LB: loop body
LE: loop exit
PB: predicated region body
PF: predicated region fallthrough
CT: control target
= control target key end

     0   :  { %vm22_vm0 = vcmask 130048   ;;  %vm52_vm1 = vcmask 261120   ;;  %s105_s1 = inlined_call_operand.vmem [shape: f32[16,32], index: 1, kind: input, shape index: {}]   ;;  %s106_s0 = inlined_call_operand.vmem [shape: f32[16,16], index: 0, kind: input, shape index: {}]   ;;  %s107_s2 = inlined_call_operand.vmem [shape: f32[1,32], index: 2, kind: input, shape index: {}]   ;;  %s108_s3 = inlined_call_operand.vmem [shape: f32[16,32], index: 3, kind: output, shape index: {}]  }
   0x1   :  { %v17_v0 = vld [vmem:[%s105_s1 + $0x8] sm:$0xff]  ;;  %v16_v1 = vld [vmem:[%s105_s1] sm:$0xff] }
   0x2   :  { %43 = vmatpush.msra.mxu0 %v17_v0  ;;  %61 = vmatpush.msra.mxu1 %v17_v0  ;;  %v14_v2 = vld [vmem:[%s106_s0] sm:$0xff]  ;;  %v15_v3 = vld [vmem:[%s106_s0 + $0x8] sm:$0xff] }
   0x3   :  { %v63_v4 = vld [vmem:[%s107_s2] ss:$0 sm:$0xff] }
   0x4   :  { %44 = vmatpush.msra.mxu0 %v16_v1  ;;  %62 = vmatpush.msra.mxu1 %v16_v1 }
   0x5   :  { %59 = vmatmul.msk.f32.vlgmr.msra.gmra.mxu0 %vm22_vm0, %v14_v2  ;;  %60 = vmatmul.msk.f32.vlgmr.msra.gmra.mxu1 %vm22_vm0, %v15_v3 }
  0x82   :  { %v46_v5 = vpop.f32.mrf.mxu0  ;;  %v49_v6 = vpop.f32.mrf.mxu1 }
  0x83   :  { %v47_v7 = vadd.f32 %v63_v4, %v46_v5  ;;  %v50_v8 = vadd.f32 %v63_v4, %v49_v6 }
  0x85   :  { %53 = vst.msk [vmem:[%s108_s3] sm:$0xff] %vm52_vm1, %v47_v7 }
  0x86   :  { %54 = vst.msk [vmem:[%s108_s3 + $0x8] sm:$0xff] %vm52_vm1, %v50_v8 }

// kernel: mamba_traj_encoder_forward.6
= control target key start
LH: loop header
LB: loop body
LE: loop exit
PB: predicated region body
PF: predicated region fallthrough
CT: control target
= control target key end

     0   :  { %s1651_s25 = smov 0   ;;  %s1653_s26 = smov 0   ;;  %s2011_s0 = inlined_call_operand.vmem [shape: f32[2,8,32], index: 0, kind: input, shape index: {}]   ;;  %s2012_s1 = inlined_call_operand.vmem [shape: f32[1,32], index: 1, kind: input, shape index: {}]   ;;  %s2013_s2 = inlined_call_operand.vmem [shape: f32[1,32], index: 2, kind: input, shape index: {}]   ;;  %s2014_s3 = inlined_call_operand.vmem [shape: f32[32,64], index: 3, kind: input, shape index: {}]   ;;  %s2015_s4 = inlined_call_operand.vmem [shape: f32[32,64], index: 4, kind: input, shape index: {}]   ;;  %s2016_s5 = inlined_call_operand.vmem [shape: f32[4,64], index: 5, kind: input, shape index: {}]   ;;  %s2017_s6 = inlined_call_operand.vmem [shape: f32[1,64], index: 6, kind: input, shape index: {}]   ;;  %s2018_s7 = inlined_call_operand.vmem [shape: f32[64,272], index: 7, kind: input, shape index: {}]   ;;  %s2019_s8 = inlined_call_operand.vmem [shape: f32[2,64], index: 8, kind: input, shape index: {}]   ;;  %s2020_s9 = inlined_call_operand.vmem [shape: f32[1,64], index: 9, kind: input, shape index: {}]   ;;  %s2021_s10 = inlined_call_operand.vmem [shape: f32[16,64], index: 10, kind: input, shape index: {}]   ;;  %s2022_s11 = inlined_call_operand.vmem [shape: f32[1,64], index: 11, kind: input, shape index: {}]   ;;  %s2023_s12 = inlined_call_operand.vmem [shape: f32[64,32], index: 12, kind: input, shape index: {}]   ;;  %s2024_s13 = inlined_call_operand.vmem [shape: f32[2,8,32], index: 13, kind: output, shape index: {}]  }
   0x1   :  { %s1655_s27 = smov 0  }
   0x2 LB: > { %s35_s28 = sadd.s32 1, %s1571_s26  ;;  %p1435_p0 = scmp.ge.s32.totalorder %s1575_s27, 1  ;;  %s1575_s27 = sphi %s1655_s27, %s23_s27   ;;  %s1571_s26 = sphi %s1653_s26, %s2026_s26   ;;  %s1567_s25 = sphi %s1651_s25, %s2025_s25  }
   0x3   : > { %p37_p1 = scmp.ge.s32.totalorder %s35_s28, 2  ;;  %p405_p2 = scmp.lt.s32.totalorder %s1575_s27, 3 }
   0x5   : > { %s2028_s28 = smov (%p37_p1, %s35_s28), 0  ;;  %p406_p3 = pnand %p1435_p0, %p405_p2 }
   0x6   : > { %p453_p4 = scmp.lt.s32.totalorder (!%p406_p3), %s1567_s25, 1 }
   0x7   : > { %409 = sbr.rel (%p406_p3) target bundleno = 996 (0x3e4), region = 72 }
   0xc   : > { %s2030_s25 = smov (!%p453_p4, %s1567_s25), 1  ;;  %vm476_vm0 = vcmask 261120   ;;  %v1577_v2 = vmov 32.0   ;;  %v520_v14 = vld [vmem:[%s2014_s3 + $0x18] sm:$0xff]  ;;  %v519_v15 = vld [vmem:[%s2014_s3 + $0x10] sm:$0xff]  ;;  %v518_v16 = vld [vmem:[%s2014_s3 + $0x8] sm:$0xff] }
   0xd   : > { %s1436_s29 = sshll.u32 %s2030_s25, 3  ;;  %1505 = vrcp.f32 %v1577_v2  ;;  %536 = vmatpush.msra.mxu1 %v520_v14  ;;  %v517_v17 = vld [vmem:[%s2014_s3] sm:$0xff]  ;;  %v1292_v18 = vld [vmem:[%s2015_s4 + $0x18] sm:$0xff]  ;;  %v1291_v19 = vld [vmem:[%s2015_s4 + $0x10] sm:$0xff]  ;;  %vm471_vm5 = vcmask 523264   ;;  %v1578_v38 = vmov 0.0  }
   0xe   : > { %s1677_s15 = scalar_lea.vmem %s2011_s0, %s1436_s29  ;;  %1308 = vmatpush.msra.mxu0 %v1292_v18  ;;  %v1290_v20 = vld [vmem:[%s2015_s4 + $0x8] sm:$0xff]  ;;  %v1289_v23 = vld [vmem:[%s2015_s4] sm:$0xff]  ;;  %472 = vst.msk [vmem:[#allocation3] sm:$0xff] %vm471_vm5, %v1578_v38  ;;  %v599_v40 = vld [vmem:[%s2018_s7 + $0xb0] sm:$0xff]  ;;  %vm664_vm6 = vcmask 130048   ;;  %vm1272_vm8 = vcmask 1041409   ;;  %s466_s30 = scalar_lea.vmem %s2024_s13, %s1436_s29 }
   0xf   : > { %v475_v0 = vld [vmem:[%s1677_s15] sm:$0xff]  ;;  %537 = vmatpush.msra.mxu1 %v519_v15  ;;  %473 = vst.msk [vmem:[#allocation8] sm:$0xff] %vm471_vm5, %v1578_v38  ;;  %v598_v39 = vld [vmem:[%s2018_s7 + $0xa8] sm:$0xff]  ;;  %v600_v41 = vld [vmem:[%s2018_s7 + $0xb8] sm:$0xff]  ;;  %632 = vmatpush.msra.mxu2 %v599_v40  ;;  %vm1274_vm9 = vcmask 1042434   ;;  %vm1276_vm10 = vcmask 1043459  }
  0x10   : > { %v477_v1 = vsel %vm476_vm0, %v475_v0, 0.0  ;;  %1309 = vmatpush.msra.mxu0 %v1291_v19  ;;  %v1494_v31 = vld [vmem:[%s2012_s1] ss:$0 sm:$0xff]  ;;  %474 = vst.msk [vmem:[#allocation8 + $0x8] sm:$0xff] %vm471_vm5, %v1578_v38  ;;  %652 = vmatpush.msra.mxu3 %v600_v41  ;;  %v595_v42 = vld [vmem:[%s2018_s7 + $0x90] sm:$0xff]  ;;  %v596_v43 = vld [vmem:[%s2018_s7 + $0x98] sm:$0xff] }
  0x11   : > { %478 = vadd.xlane.f32.xlu0 %v477_v1  ;;  %538 = vmatpush.msra.mxu1 %v518_v16  ;;  %v1495_v34 = vld [vmem:[%s2013_s2] ss:$0 sm:$0xff]  ;;  %v592_v45 = vld [vmem:[%s2018_s7 + $0x78] sm:$0xff]  ;;  %v594_v47 = vld [vmem:[%s2018_s7 + $0x88] sm:$0xff]  ;;  %vm1278_vm11 = vcmask 1044484   ;;  %vm1280_vm12 = vcmask 1045509  }
  0x12   : > { %1310 = vmatpush.msra.mxu0 %v1290_v20  ;;  %v597_v44 = vld [vmem:[%s2018_s7 + $0xa0] sm:$0xff]  ;;  %633 = vmatpush.msra.mxu2 %v596_v43  ;;  %v590_v49 = vld [vmem:[%s2018_s7 + $0x68] sm:$0xff]  ;;  %v591_v50 = vld [vmem:[%s2018_s7 + $0x70] sm:$0xff]  ;;  %vm1282_vm13 = vcmask 1046534   ;;  %vm1284_vm14 = vcmask 1047559  }
  0x13   : > { %v1506_v3 = vpop.eup %1505  ;;  %539 = vmatpush.msra.mxu1 %v517_v17  ;;  %653 = vmatpush.msra.mxu3 %v597_v44  ;;  %v593_v46 = vld [vmem:[%s2018_s7 + $0x80] sm:$0xff]  ;;  %v586_v51 = vld [vmem:[%s2018_s7 + $0x48] sm:$0xff]  ;;  %v587_v52 = vld [vmem:[%s2018_s7 + $0x50] sm:$0xff] }
  0x14   : > { %v481_v4 = vmul.f32 32.0, %v1506_v3  ;;  %vm485_vm1 = vweird.f32 %v1506_v3  ;;  %1311 = vmatpush.msra.mxu0 %v1289_v23  ;;  %634 = vmatpush.msra.mxu2 %v593_v46  ;;  %v589_v48 = vld [vmem:[%s2018_s7 + $0x60] sm:$0xff]  ;;  %v588_v54 = vld [vmem:[%s2018_s7 + $0x58] sm:$0xff]  ;;  %v583_v55 = vld [vmem:[%s2018_s7 + $0x30] sm:$0xff] }
  0x15   : > { %612 = vmatpush.msrb.mxu1 %v598_v39  ;;  %654 = vmatpush.msra.mxu3 %v594_v47  ;;  %v584_v56 = vld [vmem:[%s2018_s7 + $0x38] sm:$0xff]  ;;  %v585_v57 = vld [vmem:[%s2018_s7 + $0x40] sm:$0xff]  ;;  %v582_v60 = vld [vmem:[%s2018_s7 + $0x28] sm:$0xff] }
  0x16   : > { %v482_v5 = vsub.f32 1.0, %v481_v4  ;;  %635 = vmatpush.msra.mxu2 %v590_v49  ;;  %v580_v58 = vld [vmem:[%s2018_s7 + $0x18] sm:$0xff]  ;;  %v581_v59 = vld [vmem:[%s2018_s7 + $0x20] sm:$0xff]  ;;  %v578_v62 = vld [vmem:[%s2018_s7 + $0x8] sm:$0xff] }
  0x17   : > { %613 = vmatpush.msrb.mxu1 %v595_v42  ;;  %655 = vmatpush.msra.mxu3 %v591_v50  ;;  %v577_v61 = vld [vmem:[%s2018_s7] sm:$0xff] }
  0x18   : > { %v483_v6 = vmul.f32 %v1506_v3, %v482_v5  ;;  %636 = vmatpush.msra.mxu2 %v587_v52  ;;  %v1496_v63 = vld [vmem:[%s2016_s5] ss:$0 sm:$0xff]  ;;  %v1498_v2 = vld [vmem:[%s2016_s5 + $0x1] ss:$0 sm:$0xff] }
  0x19   : > { %614 = vmatpush.msrb.mxu1 %v592_v45  ;;  %656 = vmatpush.msra.mxu3 %v588_v54  ;;  %v1497_v1 = vld [vmem:[%s2017_s6] ss:$0 sm:$0xff]  ;;  %v1503_v50 = vld [vmem:[%s2019_s8 + $0x1] ss:$0 sm:$0xff] }
  0x1a   : > { %v484_v7 = vadd.f32 %v1506_v3, %v483_v6  ;;  %637 = vmatpush.msra.mxu2 %v584_v56  ;;  %v1499_v6 = vld [vmem:[%s2016_s5 + $0x2] ss:$0 sm:$0xff]  ;;  %v1501_v46 = vld [vmem:[%s2019_s8] ss:$0 sm:$0xff] }
  0x1b   : > { %615 = vmatpush.msrb.mxu1 %v589_v48  ;;  %657 = vmatpush.msra.mxu3 %v585_v57  ;;  %v1502_v48 = vld [vmem:[%s2020_s9] ss:$0 sm:$0xff] }
  0x1c   : > { %v486_v8 = vsel %vm485_vm1, %v1506_v3, %v484_v7  ;;  %638 = vmatpush.msra.mxu2 %v581_v59 }
  0x1d   : > { %616 = vmatpush.msrb.mxu1 %v586_v51  ;;  %658 = vmatpush.msra.mxu3 %v582_v60 }
  0x1e   : > { %639 = vmatpush.msra.mxu2 %v578_v62 }
  0x1f   : > { %617 = vmatpush.msrb.mxu1 %v583_v55 }
  0x21   : > { %618 = vmatpush.msrb.mxu1 %v580_v58 }
  0x23   : > { %619 = vmatpush.msrb.mxu1 %v577_v61 }
  0x84   : > { %v479_v9 = vpop.xlane.xlu0 %478 }
  0x85   : > { %v487_v10 = vmul.f32 %v486_v8, %v479_v9 }
  0x87   : > { %v488_v11 = vsub.f32 %v475_v0, %v487_v10  ;;  %v579_v0 = vld [vmem:[%s2018_s7 + $0x10] sm:$0xff]  ;;  %v1500_v10 = vld [vmem:[%s2016_s5 + $0x3] ss:$0 sm:$0xff] }
  0x88   : > { %659 = vmatpush.msra.mxu3 %v579_v0 }
  0x89   : > { %v489_v12 = vmul.f32 %v488_v11, %v488_v11 }
  0x8b   : > { %v490_v13 = vsel %vm476_vm0, %v489_v12, 0.0 }
  0x8c   : > { %491 = vadd.xlane.f32.xlu0 %v490_v13 }
  0xff   : > { %v492_v21 = vpop.xlane.xlu0 %491 }
 0x100   : > { %v493_v22 = vmul.f32 %v492_v21, %v486_v8 }
 0x102   : > { %v494_v24 = vadd.f32 1e-05, %v493_v22 }
 0x104   : > { %1507 = vrsqrt.f32 %v494_v24  ;;  %vm501_vm3 = vweird.f32 %v494_v24 }
 0x10a   : > { %v1508_v25 = vpop.eup %1507 }
 0x10b   : > { %v496_v26 = vmul.f32 %v1508_v25, %v494_v24  ;;  %vm502_vm2 = vweird.f32 %v1508_v25  ;;  %v802_v24 = vlaneseq }
 0x10c   : > { %vm503_vm4 = vmor %vm501_vm3, %vm502_vm2 }
 0x10d   : > { %v497_v27 = vmul.f32 %v1508_v25, %v496_v26 }
 0x10f   : > { %v498_v28 = vmul.f32 0.5, %v497_v27 }
 0x111   : > { %v499_v29 = vsub.f32 1.5, %v498_v28 }
 0x113   : > { %v500_v30 = vmul.f32 %v1508_v25, %v499_v29 }
 0x115   : > { %v504_v32 = vsel %vm503_vm4, %v1508_v25, %v500_v30  ;;  %v1816_v25 = vshrl.u32 %v802_v24, 7 }
 0x116   : > { %v505_v33 = vmul.f32 %v504_v32, %v488_v11  ;;  %v1579_v11 = vmov 0  }
 0x117   : > { %1474 = vset.pattern.permute.xlu1 %v1579_v11  ;;  %1478 = vset.pattern.permute.xlu0 %v1816_v25  ;;  %v1821_v32 = vadd.s32 8, %v1816_v25  ;;  %v710_v11 = vld [vmem:[%s2021_s10] sm:$0xff] }
 0x118   : > { %v510_v35 = vmul.f32 %v1494_v31, %v505_v33  ;;  %1476 = vset.pattern.permute.xlu2 %v1816_v25  ;;  %v1580_v31 = vmov 1  }
 0x11a   : > { %v515_v36 = vadd.f32 %v1495_v34, %v510_v35 }
 0x11c   : > { %516 = vst.msk [vmem:[#allocation2] sm:$0xff] %vm476_vm0, %v515_v36  ;;  %1438 = vmatmul.msk.f32.vlgmr.msra.gmra.mxu1 %vm476_vm0, %v515_v36 }
 0x123   : > { %v1288_v37 = vld [vmem:[#allocation2] sm:$0xff] }
 0x124   : > { %1442 = vmatmul.msk.f32.vlgmr.msra.gmra.mxu0 %vm476_vm0, %v1288_v37 }
 0x199   : > { %v541_v53 = vpop.f32.mrf.mxu1 }
 0x19a   : > { %545 = vst.msk [vmem:[#allocation3 + $0x8] sm:$0xff] %vm471_vm5, %v541_v53 }
 0x1a1   : > { %v547_v3 = vld [vmem:[#allocation3 + $0x5] sm:$0xff] }
 0x1a2   : > { %v555_v4 = vld [vmem:[#allocation3 + $0x6] sm:$0xff]  ;;  %v550_v5 = vmul.f32 %v1496_v63, %v547_v3 }
 0x1a3   : > { %v560_v7 = vld [vmem:[#allocation3 + $0x7] sm:$0xff]  ;;  %v558_v9 = vmul.f32 %v1498_v2, %v555_v4 }
 0x1a4   : > { %v554_v8 = vadd.f32 %v1497_v1, %v550_v5  ;;  %v565_v12 = vld [vmem:[#allocation3 + $0x8] sm:$0xff]  ;;  %v563_v14 = vmul.f32 %v1499_v6, %v560_v7 }
 0x1a5   : > { %v568_v16 = vmul.f32 %v1500_v10, %v565_v12 }
 0x1a6   : > { %v559_v13 = vadd.f32 %v558_v9, %v554_v8 }
 0x1a8   : > { %v564_v15 = vadd.f32 %v563_v14, %v559_v13 }
 0x1aa   : > { %v569_v17 = vadd.f32 %v568_v16, %v564_v15  ;;  %v711_v15 = vld [vmem:[%s2021_s10 + $0x8] sm:$0xff] }
 0x1ac   : > { %v570_v18 = vsub.f32 0.0, %v569_v17 }
 0x1ae   : > { %v571_v19 = vmul.f32 1.442695, %v570_v18 }
 0x1b0   : > { %1509 = vpow2.f32 %v571_v19 }
 0x1b6   : > { %v1510_v20 = vpop.eup %1509 }
 0x1b7   : > { %v573_v21 = vadd.f32 1.0, %v1510_v20 }
 0x1b9   : > { %1511 = vrcp.f32 %v573_v21 }
 0x1bf   : > { %v1512_v22 = vpop.eup %1511 }
 0x1c0   : > { %v1806_v23 = vmul.f32 %v1512_v22, %v569_v17 }
 0x1c2   : > { %576 = vst.msk [vmem:[#allocation4] sm:$0xff] %vm471_vm5, %v1806_v23  ;;  %1439 = vmatmul.msk.f32.vlgmr.msrb.gmra.mxu1 %vm471_vm5, %v1806_v23  ;;  %1440 = vmatmul.msk.f32.vlgmr.msra.gmra.mxu2 %vm471_vm5, %v1806_v23 }
 0x1c3   : > { %1441 = vmatmul.msk.f32.vlgmr.msra.gmra.mxu3 %vm471_vm5, %v1806_v23 }
 0x23f   : > { %v621_v26 = vpop.f32.mrf.mxu1 }
 0x240   : > { %669 = vperm.xlu1 %1474, %v621_v26  }
 0x245   : > { %v641_v27 = vpop.f32.mrf.mxu2 }
 0x246   : > { %v661_v28 = vpop.f32.mrf.mxu3  ;;  %v814_v29 = vperm.slane %v641_v27, 1  ;;  %v801_v30 = vperm.slane %v641_v27, 0  ;;  %v879_v33 = vperm.slane %v641_v27, 6  ;;  %v827_v34 = vperm.slane %v641_v27, 2 }
 0x247   : > { %665 = vst.msk [vmem:[#allocation5] sm:$0xff] %vm664_vm6, %v661_v28  ;;  %v840_v37 = vperm.slane %v641_v27, 3  ;;  %v853_v38 = vperm.slane %v641_v27, 4  ;;  %v866_v40 = vperm.slane %v641_v27, 5  ;;  %v892_v42 = vperm.slane %v641_v27, 7 }
 0x248   : > { %819 = vperm.xlu0 %1478, %v814_v29   ;;  %806 = vperm.xlu2 %1476, %v801_v30  }
 0x249   : > { %1475 = vset.pattern.permute.xlu1 %v1580_v31 }
 0x24a   : > { %681 = vperm.xlu1 %1475, %v621_v26  }
 0x24e   : > { %v1828_v35 = vld [vmem:[#allocation5] sm:$0xff] }
 0x24f   : > { %v1085_v36 = vperm.slane %v1828_v35, 1  ;;  %v1111_v39 = vperm.slane %v1828_v35, 3  ;;  %v1150_v41 = vperm.slane %v1828_v35, 6  ;;  %v1072_v43 = vperm.slane %v1828_v35, 0 }
 0x250   : > { %1481 = vset.pattern.permute.xlu0 %v1821_v32  ;;  %1477 = vset.pattern.permute.xlu2 %v1821_v32  ;;  %v1098_v44 = vperm.slane %v1828_v35, 2  ;;  %v1124_v47 = vperm.slane %v1828_v35, 4  ;;  %v1137_v55 = vperm.slane %v1828_v35, 5  ;;  %v1163_v8 = vperm.slane %v1828_v35, 7 }
 0x252   : > { %1479 = vset.pattern.permute.xlu1 %v1821_v32 }
 0x258   : > { %890 = vperm.xlu0 %1481, %v879_v33   ;;  %812 = vperm.xlu2 %1477, %v801_v30  }
 0x25a   : > { %825 = vperm.xlu1 %1479, %v814_v29  }
 0x260   : > { %1484 = vset.pattern.permute.xlu0 %v1816_v25  ;;  %1480 = vset.pattern.permute.xlu2 %v1816_v25 }
 0x262   : > { %838 = vperm.xlu1 %1479, %v827_v34  }
 0x268   : > { %1090 = vperm.xlu0 %1484, %v1085_v36   ;;  %832 = vperm.xlu2 %1480, %v827_v34  }
 0x26a   : > { %851 = vperm.xlu1 %1479, %v840_v37  }
 0x270   : > { %1487 = vset.pattern.permute.xlu0 %v1821_v32  ;;  %845 = vperm.xlu2 %1480, %v840_v37  }
 0x272   : > { %864 = vperm.xlu1 %1479, %v853_v38  }
 0x278   : > { %1122 = vperm.xlu0 %1487, %v1111_v39   ;;  %858 = vperm.xlu2 %1480, %v853_v38  }
 0x27a   : > { %877 = vperm.xlu1 %1479, %v866_v40  }
 0x280   : > { %1490 = vset.pattern.permute.xlu0 %v1816_v25  ;;  %871 = vperm.xlu2 %1480, %v866_v40  }
 0x282   : > { %1482 = vset.pattern.permute.xlu1 %v1816_v25 }
 0x288   : > { %1155 = vperm.xlu0 %1490, %v1150_v41   ;;  %884 = vperm.xlu2 %1480, %v879_v33  }
 0x28a   : > { %897 = vperm.xlu1 %1482, %v892_v42  }
 0x290   : > { %1483 = vset.pattern.permute.xlu2 %v1821_v32  ;;  %1493 = vset.pattern.permute.xlu0 %v1821_v32 }
 0x292   : > { %1077 = vperm.xlu1 %1482, %v1072_v43  }
 0x298   : > { %903 = vperm.xlu2 %1483, %v892_v42  }
 0x29a   : > { %1485 = vset.pattern.permute.xlu1 %v1821_v32 }
 0x2a0   : > { %1083 = vperm.xlu2 %1483, %v1072_v43  }
 0x2a2   : > { %1096 = vperm.xlu1 %1485, %v1085_v36   ;;  %v1855_v58 = vpop.permute.xlu2 %806 }
 0x2a8   : > { %1486 = vset.pattern.permute.xlu2 %v1816_v25 }
 0x2aa   : > { %1109 = vperm.xlu1 %1485, %v1098_v44  }
 0x2b0   : > { %1103 = vperm.xlu2 %1486, %v1098_v44  }
 0x2b2   : > { %1488 = vset.pattern.permute.xlu1 %v1816_v25  ;;  %v670_v45 = vpop.permute.xlu1 %669  ;;  %v1858_v61 = vpop.permute.xlu2 %812 }
 0x2b3   : > { %v673_v49 = vmul.f32 %v1501_v46, %v670_v45 }
 0x2b5   : > { %v678_v52 = vadd.f32 %v1502_v48, %v673_v49 }
 0x2b8   : > { %1116 = vperm.xlu2 %1486, %v1111_v39  }
 0x2ba   : > { %1129 = vperm.xlu1 %1488, %v1124_v47  }
 0x2bc   : > { %v682_v51 = vpop.permute.xlu1 %681 }
 0x2bd   : > { %v685_v53 = vmul.f32 %v1503_v50, %v682_v51 }
 0x2bf   : > { %v686_v54 = vadd.f32 %v685_v53, %v678_v52 }
 0x2c0   : > { %1489 = vset.pattern.permute.xlu2 %v1821_v32 }
 0x2c1   : > { %v688_v56 = vand.u32 2147483647, %v686_v54  ;;  %v687_v6 = vmax.f32 %v686_v54, 0.0 }
 0x2c2   : > { %1142 = vperm.xlu1 %1488, %v1137_v55   ;;  %v1860_v2 = vpop.permute.xlu2 %832 }
 0x2c3   : > { %v689_v57 = vsub.f32 0.0, %v688_v56 }
 0x2c5   : > { %v690_v59 = vmul.f32 1.442695, %v689_v57 }
 0x2c7   : > { %1513 = vpow2.f32 %v690_v59 }
 0x2c8   : > { %1135 = vperm.xlu2 %1489, %v1124_v47  }
 0x2ca   : > { %1491 = vset.pattern.permute.xlu1 %v1821_v32  ;;  %v1872_v24 = vpop.permute.xlu2 %845 }
 0x2cc   : > { %v1862_v7 = vpop.permute.xlu1 %825 }
 0x2cd   : > { %v1514_v60 = vpop.eup %1513 }
 0x2ce   : > { %v692_v62 = vadd.f32 1.0, %v1514_v60  ;;  %v695_v63 = vmul.f32 -0.5, %v1514_v60  ;;  %v698_v1 = vand.u32 2147483647, %v1514_v60 }
 0x2d0   : > { %1515 = vlog2.f32 %v692_v62  ;;  %1148 = vperm.xlu2 %1489, %v1137_v55   ;;  %v696_v0 = vadd.f32 1.0, %v695_v63  ;;  %vm699_vm7 = vcmp.lt.f32.partialorder %v698_v1, 0.0004427343 }
 0x2d2   : > { %1161 = vperm.xlu1 %1491, %v1150_v41   ;;  %v697_v5 = vmul.f32 %v1514_v60, %v696_v0  ;;  %v1876_v53 = vpop.permute.xlu2 %858 }
 0x2d4   : > { %v1874_v32 = vpop.permute.xlu1 %838 }
 0x2d6   : > { %v1516_v3 = vpop.eup %1515 }
 0x2d7   : > { %v694_v4 = vmul.f32 0.6931472, %v1516_v3 }
 0x2d8   : > { %1492 = vset.pattern.permute.xlu2 %v1816_v25 }
 0x2d9   : > { %v700_v9 = vsel %vm699_vm7, %v697_v5, %v694_v4 }
 0x2da   : > { %v701_v10 = vadd.f32 %v700_v9, %v687_v6  ;;  %1174 = vperm.xlu1 %1491, %v1163_v8  }
 0x2dc   : > { %v703_v12 = vrot.slane %v701_v10, 1  ;;  %v704_v13 = vrot.slane %v701_v10, 2  ;;  %v705_v14 = vrot.slane %v701_v10, 3  ;;  %v706_v16 = vrot.slane %v701_v10, 4  ;;  %v1882_v1 = vpop.permute.xlu1 %851 }
 0x2dd   : > { %v712_v17 = vperm.slane %v701_v10, 0  ;;  %v707_v20 = vrot.slane %v701_v10, 5  ;;  %v708_v28 = vrot.slane %v701_v10, 6  ;;  %v709_v33 = vrot.slane %v701_v10, 7 }
 0x2de   : > { %v713_v18 = vperm.slane %v703_v12, 0  ;;  %v714_v19 = vperm.slane %v704_v13, 0  ;;  %v715_v21 = vperm.slane %v705_v14, 0  ;;  %v716_v29 = vperm.slane %v706_v16, 0 }
 0x2df   : > { %v728_v22 = vmul.f32 %v712_v17, %v710_v11  ;;  %v729_v25 = vmul.f32 %v712_v17, %v711_v15  ;;  %v717_v34 = vperm.slane %v707_v20, 0  ;;  %v718_v41 = vperm.slane %v708_v28, 0 }
 0x2e0   : > { %v730_v26 = vmul.f32 %v713_v18, %v710_v11  ;;  %v731_v27 = vmul.f32 %v713_v18, %v711_v15  ;;  %1168 = vperm.xlu2 %1492, %v1163_v8   ;;  %v732_v30 = vmul.f32 %v714_v19, %v710_v11  ;;  %v733_v31 = vmul.f32 %v714_v19, %v711_v15  ;;  %v872_v18 = vpop.permute.xlu2 %871 }
 0x2e1   : > { %v734_v35 = vmul.f32 %v715_v21, %v710_v11  ;;  %v744_v36 = vmul.f32 1.442695, %v728_v22  ;;  %v735_v37 = vmul.f32 %v715_v21, %v711_v15  ;;  %v746_v38 = vmul.f32 1.442695, %v729_v25 }
 0x2e2   : > { %v748_v39 = vmul.f32 1.442695, %v730_v26  ;;  %v750_v40 = vmul.f32 1.442695, %v731_v27  ;;  %v736_v42 = vmul.f32 %v716_v29, %v710_v11  ;;  %v752_v43 = vmul.f32 1.442695, %v732_v30 }
 0x2e3   : > { %1517 = vpow2.f32 %v744_v36  ;;  %v737_v44 = vmul.f32 %v716_v29, %v711_v15  ;;  %v754_v45 = vmul.f32 1.442695, %v733_v31  ;;  %v719_v46 = vperm.slane %v709_v33, 0 }
 0x2e4   : > { %1519 = vpow2.f32 %v746_v38  ;;  %v738_v47 = vmul.f32 %v717_v34, %v710_v11  ;;  %v756_v48 = vmul.f32 1.442695, %v734_v35  ;;  %v739_v49 = vmul.f32 %v717_v34, %v711_v15  ;;  %v865_v28 = vpop.permute.xlu1 %864 }
 0x2e5   : > { %1521 = vpow2.f32 %v748_v39  ;;  %v758_v50 = vmul.f32 1.442695, %v735_v37  ;;  %v740_v51 = vmul.f32 %v718_v41, %v710_v11  ;;  %v760_v52 = vmul.f32 1.442695, %v736_v42 }
 0x2e6   : > { %1523 = vpow2.f32 %v750_v40  ;;  %v741_v54 = vmul.f32 %v718_v41, %v711_v15  ;;  %v762_v55 = vmul.f32 1.442695, %v737_v44  ;;  %v742_v57 = vmul.f32 %v719_v46, %v710_v11 }
 0x2e7   : > { %1525 = vpow2.f32 %v752_v43  ;;  %v764_v59 = vmul.f32 1.442695, %v738_v47  ;;  %v743_v62 = vmul.f32 %v719_v46, %v711_v15  ;;  %v766_v63 = vmul.f32 1.442695, %v739_v49 }
 0x2e8   : > { %1527 = vpow2.f32 %v754_v45  ;;  %v1880_v0 = vmul.f32 %v701_v10, %v1806_v23  ;;  %v768_v4 = vmul.f32 1.442695, %v740_v51  ;;  %v770_v6 = vmul.f32 1.442695, %v741_v54  ;;  %v820_v23 = vpop.permute.xlu0 %819  ;;  %v885_v46 = vpop.permute.xlu2 %884 }
 0x2e9   : > { %v1518_v56 = vpop.eup %1517  ;;  %1529 = vpow2.f32 %v756_v48  ;;  %v772_v9 = vmul.f32 1.442695, %v742_v57  ;;  %v774_v10 = vmul.f32 1.442695, %v743_v62 }
 0x2ea   : > { %v1520_v60 = vpop.eup %1519  ;;  %1531 = vpow2.f32 %v758_v50  ;;  %776 = vst.msk [vmem:[#allocation6] sm:$0xff] %vm471_vm5, %v1518_v56  ;;  %v795_v12 = vrot.slane %v1880_v0, 2  ;;  %v799_v14 = vrot.slane %v1880_v0, 6  ;;  %v796_v16 = vrot.slane %v1880_v0, 3  ;;  %v954_v50 = vld [vmem:[#allocation8 + $0x8] sm:$0xff] }
 0x2eb   : > { %v1522_v3 = vpop.eup %1521  ;;  %1533 = vpow2.f32 %v760_v52  ;;  %777 = vst.msk [vmem:[#allocation6 + $0x8] sm:$0xff] %vm471_vm5, %v1520_v60  ;;  %v794_v25 = vrot.slane %v1880_v0, 1  ;;  %v905_v30 = vperm.slane %v1880_v0, 0  ;;  %v797_v31 = vrot.slane %v1880_v0, 4 }
 0x2ec   : > { %v1524_v5 = vpop.eup %1523  ;;  %1535 = vpow2.f32 %v762_v55  ;;  %778 = vst.msk [vmem:[#allocation6 + $0x10] sm:$0xff] %vm471_vm5, %v1522_v3  ;;  %v907_v20 = vperm.slane %v795_v12, 0  ;;  %v911_v22 = vperm.slane %v799_v14, 0  ;;  %v908_v27 = vperm.slane %v796_v16, 0 }
 0x2ed   : > { %v1526_v8 = vpop.eup %1525  ;;  %1537 = vpow2.f32 %v764_v59  ;;  %779 = vst.msk [vmem:[#allocation6 + $0x18] sm:$0xff] %vm471_vm5, %v1524_v5  ;;  %v906_v38 = vperm.slane %v794_v25, 0  ;;  %v798_v39 = vrot.slane %v1880_v0, 5  ;;  %v921_v42 = vmul.f32 %v905_v30, %v1855_v58  ;;  %v953_v58 = vld [vmem:[#allocation8] sm:$0xff] }
 0x2ee   : > { %v1528_v11 = vpop.eup %1527  ;;  %1539 = vpow2.f32 %v766_v63  ;;  %780 = vst.msk [vmem:[#allocation6 + $0x20] sm:$0xff] %vm471_vm5, %v1526_v8  ;;  %v925_v34 = vmul.f32 %v907_v20, %v1860_v2  ;;  %v927_v41 = vmul.f32 %v908_v27, %v1872_v24  ;;  %v909_v43 = vperm.slane %v797_v31, 0 }
 0x2ef   : > { %v1530_v13 = vpop.eup %1529  ;;  %1541 = vpow2.f32 %v768_v4  ;;  %781 = vst.msk [vmem:[#allocation6 + $0x28] sm:$0xff] %vm471_vm5, %v1528_v11  ;;  %v922_v2 = vmul.f32 %v905_v30, %v1858_v61  ;;  %v923_v44 = vmul.f32 %v906_v38, %v820_v23  ;;  %v910_v45 = vperm.slane %v798_v39, 0  ;;  %v878_v61 = vpop.permute.xlu1 %877 }
 0x2f0   : > { %v1532_v15 = vpop.eup %1531  ;;  %1543 = vpow2.f32 %v770_v6  ;;  %782 = vst.msk [vmem:[#allocation6 + $0x30] sm:$0xff] %vm471_vm5, %v1530_v13  ;;  %v891_v35 = vpop.permute.xlu0 %890  ;;  %v924_v47 = vmul.f32 %v906_v38, %v1862_v7  ;;  %v929_v24 = vmul.f32 %v909_v43, %v1876_v53  ;;  %v926_v49 = vmul.f32 %v907_v20, %v1874_v32 }
 0x2f1   : > { %v1534_v17 = vpop.eup %1533  ;;  %1545 = vpow2.f32 %v772_v9  ;;  %783 = vst.msk [vmem:[#allocation6 + $0x38] sm:$0xff] %vm471_vm5, %v1532_v15  ;;  %v934_v37 = vmul.f32 %v911_v22, %v891_v35  ;;  %v955_v48 = vld [vmem:[#allocation6] sm:$0xff]  ;;  %v931_v52 = vmul.f32 %v910_v45, %v872_v18  ;;  %v928_v7 = vmul.f32 %v908_v27, %v1882_v1 }
 0x2f2   : > { %v1536_v19 = vpop.eup %1535  ;;  %1547 = vpow2.f32 %v774_v10  ;;  %784 = vst.msk [vmem:[#allocation6 + $0x40] sm:$0xff] %vm471_vm5, %v1534_v17  ;;  %v956_v51 = vld [vmem:[#allocation6 + $0x8] sm:$0xff]  ;;  %v800_v54 = vrot.slane %v1880_v0, 7  ;;  %v959_v55 = vmul.f32 %v955_v48, %v953_v58  ;;  %v933_v53 = vmul.f32 %v911_v22, %v885_v46  ;;  %v904_v57 = vpop.permute.xlu2 %903 }
 0x2f3   : > { %v1538_v21 = vpop.eup %1537  ;;  %785 = vst.msk [vmem:[#allocation6 + $0x48] sm:$0xff] %vm471_vm5, %v1536_v19  ;;  %v960_v56 = vmul.f32 %v956_v51, %v954_v50  ;;  %v930_v32 = vmul.f32 %v909_v43, %v865_v28  ;;  %v932_v0 = vmul.f32 %v910_v45, %v878_v61  ;;  %v966_v3 = vld [vmem:[#allocation6 + $0x10] sm:$0xff] }
 0x2f4   : > { %v1540_v26 = vpop.eup %1539  ;;  %786 = vst.msk [vmem:[#allocation6 + $0x50] sm:$0xff] %vm471_vm5, %v1538_v21  ;;  %v912_v60 = vperm.slane %v800_v54, 0  ;;  %v967_v6 = vld [vmem:[#allocation6 + $0x18] sm:$0xff] }
 0x2f5   : > { %v1542_v29 = vpop.eup %1541  ;;  %787 = vst.msk [vmem:[#allocation6 + $0x58] sm:$0xff] %vm471_vm5, %v1540_v26  ;;  %v978_v13 = vld [vmem:[#allocation6 + $0x20] sm:$0xff] }
 0x2f6   : > { %v1544_v33 = vpop.eup %1543  ;;  %788 = vst.msk [vmem:[#allocation6 + $0x60] sm:$0xff] %vm471_vm5, %v1542_v29  ;;  %v936_v4 = vmul.f32 %v912_v60, %v904_v57  ;;  %v979_v16 = vld [vmem:[#allocation6 + $0x28] sm:$0xff] }
 0x2f7   : > { %v1546_v36 = vpop.eup %1545  ;;  %789 = vst.msk [vmem:[#allocation6 + $0x68] sm:$0xff] %vm471_vm5, %v1544_v33  ;;  %v990_v21 = vld [vmem:[#allocation6 + $0x30] sm:$0xff] }
 0x2f8   : > { %v1548_v40 = vpop.eup %1547  ;;  %790 = vst.msk [vmem:[#allocation6 + $0x70] sm:$0xff] %vm471_vm5, %v1546_v36  ;;  %v991_v26 = vld [vmem:[#allocation6 + $0x38] sm:$0xff] }
 0x2f9   : > { %791 = vst.msk [vmem:[#allocation6 + $0x78] sm:$0xff] %vm471_vm5, %v1548_v40  ;;  %v1002_v33 = vld [vmem:[#allocation6 + $0x40] sm:$0xff] }
 0x2fa   : > { %941 = vst.msk [vmem:[#allocation7 + $0x20] sm:$0xff] %vm471_vm5, %v925_v34  ;;  %v1084_v35 = vpop.permute.xlu2 %1083 }
 0x2fb   : > { %950 = vst.msk [vmem:[#allocation7 + $0x68] sm:$0xff] %vm471_vm5, %v934_v37  ;;  %v1003_v37 = vld [vmem:[#allocation6 + $0x48] sm:$0xff] }
 0x2fc   : > { %943 = vst.msk [vmem:[#allocation7 + $0x30] sm:$0xff] %vm471_vm5, %v927_v41  ;;  %v898_v5 = vpop.permute.xlu1 %897 }
 0x2fd   : > { %937 = vst.msk [vmem:[#allocation7] sm:$0xff] %vm471_vm5, %v921_v42  ;;  %v935_v12 = vmul.f32 %v912_v60, %v898_v5  ;;  %v1014_v42 = vld [vmem:[#allocation6 + $0x50] sm:$0xff]  ;;  %v1026_v48 = vld [vmem:[#allocation6 + $0x60] sm:$0xff] }
 0x2fe   : > { %938 = vst.msk [vmem:[#allocation7 + $0x8] sm:$0xff] %vm471_vm5, %v922_v2  ;;  %v1027_v51 = vld [vmem:[#allocation6 + $0x68] sm:$0xff] }
 0x2ff   : > { %939 = vst.msk [vmem:[#allocation7 + $0x10] sm:$0xff] %vm471_vm5, %v923_v44  ;;  %v1015_v44 = vld [vmem:[#allocation6 + $0x58] sm:$0xff] }
 0x300   : > { %940 = vst.msk [vmem:[#allocation7 + $0x18] sm:$0xff] %vm471_vm5, %v924_v47 }
 0x301   : > { %945 = vst.msk [vmem:[#allocation7 + $0x40] sm:$0xff] %vm471_vm5, %v929_v24  ;;  %v981_v17 = vld [vmem:[#allocation7 + $0x20] sm:$0xff] }
 0x302   : > { %942 = vst.msk [vmem:[#allocation7 + $0x28] sm:$0xff] %vm471_vm5, %v926_v49 }
 0x303   : > { %947 = vst.msk [vmem:[#allocation7 + $0x50] sm:$0xff] %vm471_vm5, %v931_v52  ;;  %v993_v27 = vld [vmem:[#allocation7 + $0x30] sm:$0xff] }
 0x304   : > { %v957_v59 = vld [vmem:[#allocation7] sm:$0xff]  ;;  %944 = vst.msk [vmem:[#allocation7 + $0x38] sm:$0xff] %vm471_vm5, %v928_v7  ;;  %v1078_v29 = vpop.permute.xlu1 %1077 }
 0x305   : > { %v958_v62 = vld [vmem:[#allocation7 + $0x8] sm:$0xff]  ;;  %v961_v63 = vadd.f32 %v959_v55, %v957_v59  ;;  %949 = vst.msk [vmem:[#allocation7 + $0x60] sm:$0xff] %vm471_vm5, %v933_v53 }
 0x306   : > { %v962_v1 = vadd.f32 %v960_v56, %v958_v62  ;;  %946 = vst.msk [vmem:[#allocation7 + $0x48] sm:$0xff] %vm471_vm5, %v930_v32  ;;  %v969_v9 = vld [vmem:[#allocation7 + $0x10] sm:$0xff]  ;;  %v1030_v55 = vld [vmem:[#allocation7 + $0x68] sm:$0xff]  ;;  %v1039_v32 = vld [vmem:[#allocation6 + $0x78] sm:$0xff] }
 0x307   : > { %963 = vst.msk [vmem:[#allocation7] sm:$0xff] %vm471_vm5, %v961_v63  ;;  %v971_v8 = vmul.f32 %v966_v3, %v961_v63  ;;  %v970_v10 = vld [vmem:[#allocation7 + $0x18] sm:$0xff]  ;;  %v1038_v56 = vld [vmem:[#allocation6 + $0x70] sm:$0xff] }
 0x308   : > { %964 = vst.msk [vmem:[#allocation7 + $0x8] sm:$0xff] %vm471_vm5, %v962_v1  ;;  %v972_v11 = vmul.f32 %v967_v6, %v962_v1  ;;  %v1005_v38 = vld [vmem:[#allocation7 + $0x40] sm:$0xff]  ;;  %v1091_v6 = vpop.permute.xlu0 %1090 }
 0x309   : > { %v973_v23 = vadd.f32 %v971_v8, %v969_v9  ;;  %948 = vst.msk [vmem:[#allocation7 + $0x58] sm:$0xff] %vm471_vm5, %v932_v0  ;;  %v982_v20 = vld [vmem:[#allocation7 + $0x28] sm:$0xff] }
 0x30a   : > { %v974_v14 = vadd.f32 %v972_v11, %v970_v10  ;;  %952 = vst.msk [vmem:[#allocation7 + $0x78] sm:$0xff] %vm471_vm5, %v936_v4  ;;  %v1017_v45 = vld [vmem:[#allocation7 + $0x50] sm:$0xff]  ;;  %v1104_v61 = vpop.permute.xlu2 %1103 }
 0x30b   : > { %975 = vst.msk [vmem:[#allocation7 + $0x10] sm:$0xff] %vm471_vm5, %v973_v23  ;;  %v983_v15 = vmul.f32 %v978_v13, %v973_v23  ;;  %v994_v31 = vld [vmem:[#allocation7 + $0x38] sm:$0xff] }
 0x30c   : > { %976 = vst.msk [vmem:[#allocation7 + $0x18] sm:$0xff] %vm471_vm5, %v974_v14  ;;  %v984_v18 = vmul.f32 %v979_v16, %v974_v14  ;;  %v1029_v52 = vld [vmem:[#allocation7 + $0x60] sm:$0xff] }
 0x30d   : > { %v985_v19 = vadd.f32 %v983_v15, %v981_v17  ;;  %951 = vst.msk [vmem:[#allocation7 + $0x70] sm:$0xff] %vm471_vm5, %v935_v12  ;;  %v1006_v41 = vld [vmem:[#allocation7 + $0x48] sm:$0xff] }
 0x30e   : > { %v986_v22 = vadd.f32 %v984_v18, %v982_v20  ;;  %v1055_v12 = vld [vmem:[#allocation7] sm:$0xff] }
 0x30f   : > { %v995_v25 = vmul.f32 %v990_v21, %v985_v19  ;;  %987 = vst.msk [vmem:[#allocation7 + $0x20] sm:$0xff] %vm471_vm5, %v985_v19  ;;  %v1056_v10 = vld [vmem:[#allocation7 + $0x8] sm:$0xff]  ;;  %v1176_v15 = vmul.f32 %v1078_v29, %v1055_v12 }
 0x310   : > { %988 = vst.msk [vmem:[#allocation7 + $0x28] sm:$0xff] %vm471_vm5, %v986_v22  ;;  %v996_v28 = vmul.f32 %v991_v26, %v986_v22  ;;  %v1018_v58 = vld [vmem:[#allocation7 + $0x58] sm:$0xff]  ;;  %v1177_v19 = vmul.f32 %v1084_v35, %v1056_v10 }
 0x311   : > { %v997_v30 = vadd.f32 %v995_v25, %v993_v27  ;;  %v1042_v62 = vld [vmem:[#allocation7 + $0x78] sm:$0xff] }
 0x312   : > { %v998_v34 = vadd.f32 %v996_v28, %v994_v31  ;;  %v1117_v3 = vpop.permute.xlu2 %1116  ;;  %v1057_v8 = vld [vmem:[#allocation7 + $0x10] sm:$0xff] }
 0x313   : > { %v1007_v36 = vmul.f32 %v1002_v33, %v997_v30  ;;  %999 = vst.msk [vmem:[#allocation7 + $0x30] sm:$0xff] %vm471_vm5, %v997_v30  ;;  %v1058_v9 = vld [vmem:[#allocation7 + $0x18] sm:$0xff]  ;;  %v1178_v14 = vmul.f32 %v1091_v6, %v1057_v8  ;;  %v1192_v33 = vsel %vm471_vm5, %v1176_v15, 0.0 }
 0x314   : > { %1000 = vst.msk [vmem:[#allocation7 + $0x38] sm:$0xff] %vm471_vm5, %v998_v34  ;;  %v1008_v39 = vmul.f32 %v1003_v37, %v998_v34  ;;  %v1097_v47 = vpop.permute.xlu1 %1096  ;;  %v1041_v60 = vld [vmem:[#allocation7 + $0x70] sm:$0xff]  ;;  %v1123_v37 = vpop.permute.xlu0 %1122 }
 0x315   : > { %v1009_v40 = vadd.f32 %v1007_v36, %v1005_v38  ;;  %v1179_v11 = vmul.f32 %v1097_v47, %v1058_v9  ;;  %v1201_v31 = vsel %vm471_vm5, %v1178_v14, 0.0  ;;  %v1330_v47 = vld [vmem:[%s2023_s12 + $0x30] sm:$0xff] }
 0x316   : > { %v1010_v43 = vadd.f32 %v1008_v39, %v1006_v41  ;;  %v1059_v16 = vld [vmem:[#allocation7 + $0x20] sm:$0xff] }
 0x317   : > { %1011 = vst.msk [vmem:[#allocation7 + $0x40] sm:$0xff] %vm471_vm5, %v1009_v40  ;;  %v1019_v2 = vmul.f32 %v1014_v42, %v1009_v40  ;;  %v1060_v23 = vld [vmem:[#allocation7 + $0x28] sm:$0xff]  ;;  %v1180_v17 = vmul.f32 %v1104_v61, %v1059_v16  ;;  %v1202_v20 = vsel %vm471_vm5, %v1179_v11, 0.0  ;;  %v1193_v42 = vsel %vm471_vm5, %v1177_v19, 0.0 }
 0x318   : > { %1012 = vst.msk [vmem:[#allocation7 + $0x48] sm:$0xff] %vm471_vm5, %v1010_v43  ;;  %v1020_v46 = vmul.f32 %v1015_v44, %v1010_v43  ;;  %v1203_v38 = vadd.f32 %v1202_v20, %v1201_v31  ;;  %v1194_v44 = vadd.f32 %v1193_v42, %v1192_v33  ;;  %v1326_v11 = vld [vmem:[%s2023_s12 + $0x10] sm:$0xff] }
 0x319   : > { %v1021_v24 = vadd.f32 %v1019_v2, %v1017_v45  ;;  %v1210_v35 = vsel %vm471_vm5, %v1180_v17, 0.0 }
 0x31a   : > { %v1022_v49 = vadd.f32 %v1020_v46, %v1018_v58  ;;  %v1061_v25 = vld [vmem:[#allocation7 + $0x30] sm:$0xff] }
 0x31b   : > { %1023 = vst.msk [vmem:[#allocation7 + $0x50] sm:$0xff] %vm471_vm5, %v1021_v24  ;;  %v1031_v50 = vmul.f32 %v1026_v48, %v1021_v24  ;;  %v1062_v22 = vld [vmem:[#allocation7 + $0x38] sm:$0xff]  ;;  %v1182_v34 = vmul.f32 %v1117_v3, %v1061_v25  ;;  %v1331_v46 = vld [vmem:[%s2023_s12 + $0x38] sm:$0xff]  ;;  %v1962_v48 = vpop.f32.mrf.mxu0 }
 0x31c   : > { %1024 = vst.msk [vmem:[#allocation7 + $0x58] sm:$0xff] %vm471_vm5, %v1022_v49  ;;  %v1032_v7 = vmul.f32 %v1027_v51, %v1022_v49  ;;  %v1110_v1 = vpop.permute.xlu1 %1109  ;;  %v1183_v41 = vmul.f32 %v1123_v37, %v1062_v22  ;;  %1343 = vmatpush.msrb.mxu0 %v1331_v46  ;;  %v1204_v49 = vrot.slane %v1203_v38, 4  ;;  %v1324_v25 = vld [vmem:[%s2023_s12] sm:$0xff] }
 0x31d   : > { %v1033_v54 = vadd.f32 %v1031_v50, %v1029_v52  ;;  %v1181_v13 = vmul.f32 %v1110_v1, %v1060_v23  ;;  %v1219_v24 = vsel %vm471_vm5, %v1182_v34, 0.0  ;;  %v1329_v50 = vld [vmem:[%s2023_s12 + $0x28] sm:$0xff] }
 0x31e   : > { %v1034_v53 = vadd.f32 %v1032_v7, %v1030_v55  ;;  %v1063_v21 = vld [vmem:[#allocation7 + $0x40] sm:$0xff]  ;;  %v1220_v51 = vsel %vm471_vm5, %v1183_v41, 0.0  ;;  %1344 = vmatpush.msrb.mxu0 %v1330_v47 }
 0x31f   : > { %1035 = vst.msk [vmem:[#allocation7 + $0x60] sm:$0xff] %vm471_vm5, %v1033_v54  ;;  %v1043_v57 = vmul.f32 %v1038_v56, %v1033_v54  ;;  %v1211_v26 = vsel %vm471_vm5, %v1181_v13, 0.0  ;;  %v1064_v29 = vld [vmem:[#allocation7 + $0x48] sm:$0xff]  ;;  %v1221_v56 = vadd.f32 %v1220_v51, %v1219_v24  ;;  %v1325_v13 = vld [vmem:[%s2023_s12 + $0x8] sm:$0xff] }
 0x320   : > { %1036 = vst.msk [vmem:[#allocation7 + $0x68] sm:$0xff] %vm471_vm5, %v1034_v53  ;;  %v1044_v59 = vmul.f32 %v1039_v32, %v1034_v53  ;;  %v1212_v43 = vadd.f32 %v1211_v26, %v1210_v35  ;;  %v1195_v53 = vrot.slane %v1194_v44, 4  ;;  %1345 = vmatpush.msrb.mxu0 %v1329_v50 }
 0x321   : > { %v1045_v63 = vadd.f32 %v1043_v57, %v1041_v60  ;;  %v1328_v57 = vld [vmem:[%s2023_s12 + $0x20] sm:$0xff]  ;;  %v1156_v60 = vpop.permute.xlu0 %1155 }
 0x322   : > { %v1046_v0 = vadd.f32 %v1044_v59, %v1042_v62  ;;  %v1136_v5 = vpop.permute.xlu2 %1135  ;;  %v1065_v30 = vld [vmem:[#allocation7 + $0x50] sm:$0xff]  ;;  %v1213_v52 = vrot.slane %v1212_v43, 4  ;;  %v1316_v59 = vsub.f32 0.0, %v1962_v48  ;;  %v1205_v62 = vadd.f32 %v1204_v49, %v1203_v38  ;;  %1346 = vmatpush.msrb.mxu0 %v1328_v57 }
 0x323   : > { %1047 = vst.msk [vmem:[#allocation7 + $0x70] sm:$0xff] %vm471_vm5, %v1045_v63  ;;  %v1185_v39 = vmul.f32 %v1136_v5, %v1064_v29  ;;  %v1066_v40 = vld [vmem:[#allocation7 + $0x58] sm:$0xff]  ;;  %v1327_v63 = vld [vmem:[%s2023_s12 + $0x18] sm:$0xff]  ;;  %v1222_v5 = vrot.slane %v1221_v56, 4 }
 0x324   : > { %1048 = vst.msk [vmem:[#allocation7 + $0x78] sm:$0xff] %vm471_vm5, %v1046_v0  ;;  %v1214_v1 = vadd.f32 %v1213_v52, %v1212_v43  ;;  %v1317_v23 = vmul.f32 1.442695, %v1316_v59  ;;  %1347 = vmatpush.msrb.mxu0 %v1327_v63  ;;  %v1206_v12 = vrot.slane %v1205_v62, 2 }
 0x325   : > { %v1229_v61 = vsel %vm471_vm5, %v1185_v39, 0.0  ;;  %v1223_v19 = vadd.f32 %v1222_v5, %v1221_v56 }
 0x326   : > { %v1067_v55 = vld [vmem:[#allocation7 + $0x60] sm:$0xff]  ;;  %v1215_v15 = vrot.slane %v1214_v1, 2  ;;  %1348 = vmatpush.msrb.mxu0 %v1326_v11  ;;  %1549 = vpow2.f32 %v1317_v23  ;;  %v1207_v26 = vadd.f32 %v1206_v12, %v1205_v62 }
 0x327   : > { %v1188_v0 = vmul.f32 %v1156_v60, %v1067_v55  ;;  %v1068_v8 = vld [vmem:[#allocation7 + $0x68] sm:$0xff]  ;;  %v1224_v29 = vrot.slane %v1223_v19, 2 }
 0x328   : > { %1349 = vmatpush.msrb.mxu0 %v1325_v13 }
 0x329   : > { %v1246_v14 = vsel %vm471_vm5, %v1188_v0, 0.0  ;;  %v1225_v47 = vadd.f32 %v1224_v29, %v1223_v19 }
 0x32a   : > { %v1149_v27 = vpop.permute.xlu2 %1148  ;;  %1350 = vmatpush.msrb.mxu0 %v1324_v25 }
 0x32b   : > { %v1187_v2 = vmul.f32 %v1149_v27, %v1066_v40  ;;  %v1069_v27 = vld [vmem:[#allocation7 + $0x70] sm:$0xff]  ;;  %v1070_v35 = vld [vmem:[#allocation7 + $0x78] sm:$0xff]  ;;  %v1208_v40 = vrot.slane %v1207_v26, 1  ;;  %v1226_v55 = vrot.slane %v1225_v47, 1 }
 0x32c   : > { %v1130_v4 = vpop.permute.xlu1 %1129  ;;  %v1550_v42 = vpop.eup %1549 }
 0x32d   : > { %v1184_v28 = vmul.f32 %v1130_v4, %v1063_v21  ;;  %v1238_v7 = vsel %vm471_vm5, %v1187_v2, 0.0  ;;  %v1196_v4 = vadd.f32 %v1195_v53, %v1194_v44  ;;  %v1209_v50 = vadd.f32 %v1208_v40, %v1207_v26 }
 0x32e   : > { %v1227_v63 = vadd.f32 %v1226_v55, %v1225_v47 }
 0x32f   : > { %v1228_v45 = vsel %vm471_vm5, %v1184_v28, 0.0 }
 0x330   : > { %v1230_v54 = vadd.f32 %v1229_v61, %v1228_v45  ;;  %v1319_v61 = vadd.f32 1.0, %v1550_v42 }
 0x332   : > { %v1231_v3 = vrot.slane %v1230_v54, 4  ;;  %1551 = vrcp.f32 %v1319_v61 }
 0x334   : > { %v1143_v18 = vpop.permute.xlu1 %1142  ;;  %v1232_v16 = vadd.f32 %v1231_v3, %v1230_v54 }
 0x335   : > { %v1186_v36 = vmul.f32 %v1143_v18, %v1065_v30  ;;  %v1197_v18 = vrot.slane %v1196_v4, 2  ;;  %v1216_v30 = vadd.f32 %v1215_v15, %v1214_v1 }
 0x336   : > { %v1233_v31 = vrot.slane %v1232_v16, 2 }
 0x337   : > { %v1237_v58 = vsel %vm471_vm5, %v1186_v36, 0.0  ;;  %v1198_v34 = vadd.f32 %v1197_v18, %v1196_v4  ;;  %v1217_v43 = vrot.slane %v1216_v30, 1  ;;  %v1504_v4 = vld [vmem:[%s2022_s11] ss:$0 sm:$0xff] }
 0x338   : > { %v1239_v32 = vadd.f32 %v1238_v7, %v1237_v58  ;;  %v1234_v2 = vadd.f32 %v1233_v31, %v1232_v16  ;;  %v1552_v11 = vpop.eup %1551  ;;  %v1323_v18 = vld [vmem:[%s1677_s15] sm:$0xff] }
 0x339   : > { %v1199_v46 = vrot.slane %v1198_v34, 1  ;;  %v1218_v52 = vadd.f32 %v1217_v43, %v1216_v30  ;;  %v1321_v15 = vmul.f32 %v1552_v11, %v1962_v48 }
 0x33a   : > { %v1240_v6 = vrot.slane %v1239_v32, 4  ;;  %v1169_v21 = vpop.permute.xlu2 %1168  ;;  %v1235_v7 = vrot.slane %v1234_v2, 1 }
 0x33b   : > { %v1190_v33 = vmul.f32 %v1169_v21, %v1069_v27  ;;  %v1200_v54 = vadd.f32 %v1199_v46, %v1198_v34 }
 0x33c   : > { %v1241_v20 = vadd.f32 %v1240_v6, %v1239_v32  ;;  %v1236_v62 = vadd.f32 %v1235_v7, %v1234_v2 }
 0x33d   : > { %v1255_v44 = vsel %vm471_vm5, %v1190_v33, 0.0  ;;  %v1273_v57 = vsel %vm1272_vm8, %v1209_v50, %v1200_v54 }
 0x33e   : > { %v1242_v36 = vrot.slane %v1241_v20, 2  ;;  %v1275_v60 = vsel %vm1274_vm9, %v1218_v52, %v1273_v57 }
 0x33f   : > { %v1277_v5 = vsel %vm1276_vm10, %v1227_v63, %v1275_v60 }
 0x340   : > { %v1243_v24 = vadd.f32 %v1242_v36, %v1241_v20 }
 0x342   : > { %v1244_v53 = vrot.slane %v1243_v24, 1 }
 0x344   : > { %v1162_v9 = vpop.permute.xlu1 %1161  ;;  %v1245_v0 = vadd.f32 %v1244_v53, %v1243_v24 }
 0x345   : > { %v1189_v10 = vmul.f32 %v1162_v9, %v1068_v8  ;;  %v1049_v8 = vld [vmem:[#allocation4] sm:$0xff]  ;;  %v1279_v9 = vsel %vm1278_vm11, %v1236_v62, %v1277_v5 }
 0x346   : > { %v1281_v23 = vsel %vm1280_vm12, %v1245_v0, %v1279_v9  ;;  %v1054_v12 = vmul.f32 %v1504_v4, %v1049_v8 }
 0x347   : > { %v1247_v17 = vsel %vm471_vm5, %v1189_v10, 0.0 }
 0x348   : > { %v1248_v22 = vadd.f32 %v1247_v17, %v1246_v14 }
 0x34a   : > { %v1249_v28 = vrot.slane %v1248_v22, 4 }
 0x34c   : > { %v1250_v37 = vadd.f32 %v1249_v28, %v1248_v22  ;;  %v1175_v38 = vpop.permute.xlu1 %1174 }
 0x34d   : > { %v1191_v39 = vmul.f32 %v1175_v38, %v1070_v35 }
 0x34e   : > { %v1251_v41 = vrot.slane %v1250_v37, 2 }
 0x34f   : > { %v1256_v45 = vsel %vm471_vm5, %v1191_v39, 0.0 }
 0x350   : > { %v1257_v58 = vadd.f32 %v1256_v45, %v1255_v44  ;;  %v1252_v49 = vadd.f32 %v1251_v41, %v1250_v37 }
 0x352   : > { %v1258_v51 = vrot.slane %v1257_v58, 4  ;;  %v1253_v32 = vrot.slane %v1252_v49, 1 }
 0x354   : > { %v1259_v56 = vadd.f32 %v1258_v51, %v1257_v58  ;;  %v1254_v3 = vadd.f32 %v1253_v32, %v1252_v49 }
 0x356   : > { %v1260_v59 = vrot.slane %v1259_v56, 2  ;;  %v1283_v13 = vsel %vm1282_vm13, %v1254_v3, %v1281_v23 }
 0x358   : > { %v1261_v1 = vadd.f32 %v1260_v59, %v1259_v56 }
 0x35a   : > { %v1262_v6 = vrot.slane %v1261_v1, 1 }
 0x35c   : > { %v1263_v10 = vadd.f32 %v1262_v6, %v1261_v1 }
 0x35e   : > { %v1285_v14 = vsel %vm1284_vm14, %v1263_v10, %v1283_v13 }
 0x35f   : > { %v1287_v16 = vadd.f32 %v1285_v14, %v1054_v12 }
 0x361   : > { %v1322_v17 = vmul.f32 %v1321_v15, %v1287_v16 }
 0x363   : > { %1443 = vmatmul.msk.f32.vlgmr.msrb.gmra.mxu0 %vm471_vm5, %v1322_v17 }
 0x3e0   : > { %v1352_v19 = vpop.f32.mrf.mxu0 }
 0x3e1   : > { %v1355_v20 = vadd.f32 %v1352_v19, %v1323_v18 }
 0x3e3   : > { %1356 = vst.msk [vmem:[%s466_s30] sm:$0xff] %vm476_vm0, %v1355_v20 }
 0x3e4 PF: > { %s23_s27 = sadd.s32 1, %s1575_s27   ;;  %s2025_s25 = smov %s1571_s26 }
 0x3e5   : > { %p20_p5 = scmp.ge.s32.totalorder %s23_s27, 4   ;;  %s2026_s26 = smov %s2028_s28 }
 0x3e7   :  { %22 = sbr.rel (!%p20_p5) target bundleno = 2 (0x2), region = 120 }

</bundles_post_ra>
